<compile_context>
chip_gen: v5e
topology: v5e:2x2
jax: 0.10.0
libtpu: 0.0.40
codegen_flags: <defaults>
</compile_context>

<pallas_src>
import functools

import jax
import jax.numpy as jnp
from jax.experimental import pallas as pl
from jax.experimental.pallas import tpu as pltpu

EPS = 1e-5  # PyTorch LayerNorm default eps

# Row layout of the packed gamma/beta/bias stack (one (16, W) array).
_R_G1, _R_B1 = 0, 1
_R_BQ = 2            # scale pre-folded
_R_BKV = 3           # bk in lanes [0:D], bv in lanes [D:2D]
_R_BO = 4
_R_G2, _R_B2 = 5, 6
_R_BM2 = 7
_R_G3, _R_B3 = 8, 9
_R_BP = 10
_R_BM1 = 11          # width = padded hidden
_VEC_ROWS = 16       # padded to a sublane multiple


def _layernorm(x, g, b, inv_d):
    # Padded-lane safe: x, g and b are zero in padded lanes and the statistics
    # divide by the *real* feature count (inv_d = 1/D), so padded output lanes
    # stay exactly 0 (E[x^2] - mu^2 form so padded lanes contribute nothing).
    s1 = jnp.sum(x, axis=-1, keepdims=True)
    s2 = jnp.sum(x * x, axis=-1, keepdims=True)
    mu = s1 * inv_d
    var = s2 * inv_d - mu * mu
    return (x - mu) * jax.lax.rsqrt(var + EPS) * g + b


def _erf(x):
    # Abramowitz & Stegun 7.1.26, max abs error ~1.5e-7 (float32-accurate).
    ax = jnp.abs(x)
    t = 1.0 / (1.0 + 0.3275911 * ax)
    poly = ((((1.061405429 * t - 1.453152027) * t + 1.421413741) * t
             - 0.284496736) * t + 0.254829592) * t
    r = 1.0 - poly * jnp.exp(-ax * ax)
    return jnp.where(x < 0.0, -r, r)


def _gelu(x):
    # nn.GELU default = exact erf GELU
    return 0.5 * x * (1.0 + _erf(x * 0.7071067811865476))


def _outer_block_kernel(num_heads, d_real, kv_pad, h_pad,
                        x_ref, ip_ref, wcat_ref, vecs_ref, o_ref):
    bb, N, Dp = x_ref.shape
    _, Nc, _ = ip_ref.shape
    H = num_heads
    hd = d_real // H
    KVp = kv_pad
    Hp = h_pad
    inv_d = 1.0 / float(d_real)

    # Column offsets inside the packed weight slab [wq | wk|wv | wo | wp | w1 | w2].
    c_wq = 0
    c_wkv = c_wq + Dp
    c_wo = c_wkv + KVp
    c_wp = c_wo + Dp
    c_w1 = c_wp + Dp
    c_w2 = c_w1 + Hp

    def wmat(c0, rows, cols):
        # Static, 128-lane-aligned view into the weight slab (zero-cost slice).
        return wcat_ref[0:rows, c0:c0 + cols]

    def vec(row, width):
        # One (1, width) bias/gamma/beta row (width is a multiple of 128).
        return vecs_ref[row:row + 1, 0:width]

    # Flatten batch into sublanes (free reshape: leading dims merge only).
    x = x_ref[...].reshape(bb * N, Dp)        # (bb*N, Dp)
    ip = ip_ref[...].reshape(bb * Nc, Dp)     # (bb*Nc, Dp)

    # ---- inner_proj = proj(norm3(inner_patches)) ----
    ip_n = _layernorm(ip, vec(_R_G3, Dp), vec(_R_B3, Dp), inv_d)
    inner_proj = (jnp.dot(ip_n, wmat(c_wp, Dp, Dp),
                          preferred_element_type=jnp.float32)
                  + vec(_R_BP, Dp))                                  # (bb*Nc, Dp)

    # ---- x = x + attn(norm1(x), inner_proj) ----
    xn1 = _layernorm(x, vec(_R_G1, Dp), vec(_R_B1, Dp), inv_d)

    # Dense, hoisted projections: one 128-lane matmul for q and one for packed k|v.
    q = (jnp.dot(xn1, wmat(c_wq, Dp, Dp), preferred_element_type=jnp.float32)
         + vec(_R_BQ, Dp))                                           # scale pre-folded
    kv = (jnp.dot(inner_proj, wmat(c_wkv, Dp, KVp),
                  preferred_element_type=jnp.float32)
          + vec(_R_BKV, KVp))                     # k in lanes [0:D], v in [D:2D]

    # Per-(batch, head) scores, stacked along sublanes for one batched softmax.
    scores = []
    for b in range(bb):                           # static loops (scores only)
        qb = q[b * N:(b + 1) * N, :]
        kb = kv[b * Nc:(b + 1) * Nc, :]
        for h in range(H):
            hs = h * hd
            scores.append(jax.lax.dot_general(
                qb[:, hs:hs + hd], kb[:, hs:hs + hd],
                (((1,), (1,)), ((), ())),
                preferred_element_type=jnp.float32))                 # (N, Nc)
    s_all = jnp.concatenate(scores, axis=0) if len(scores) > 1 else scores[0]
    s_all = s_all - jnp.max(s_all, axis=-1, keepdims=True)
    p_all = jnp.exp(s_all)
    p_all = p_all * pl.reciprocal(jnp.sum(p_all, axis=-1, keepdims=True),
                                  approx=True)                       # (bb*H*N, Nc)

    # p @ v per head, heads packed back into lanes [0:D], then ONE out-proj matmul.
    rows = []
    pad_lanes = Dp - d_real
    for b in range(bb):
        vb = kv[b * Nc:(b + 1) * Nc, :]
        heads = []
        for h in range(H):
            idx = b * H + h
            ph = p_all[idx * N:(idx + 1) * N, :]
            heads.append(jnp.dot(
                ph, vb[:, d_real + h * hd:d_real + (h + 1) * hd],
                preferred_element_type=jnp.float32))                 # (N, hd)
        if pad_lanes:
            heads.append(jnp.zeros((N, pad_lanes), jnp.float32))
        rows.append(jnp.concatenate(heads, axis=-1))                 # (N, Dp)
    attn_in = jnp.concatenate(rows, axis=0) if len(rows) > 1 else rows[0]
    attn = (jnp.dot(attn_in, wmat(c_wo, Dp, Dp),
                    preferred_element_type=jnp.float32)
            + vec(_R_BO, Dp))                                        # (bb*N, Dp)
    x1 = x + attn

    # ---- x = x + mlp(norm2(x)) ----
    xn2 = _layernorm(x1, vec(_R_G2, Dp), vec(_R_B2, Dp), inv_d)
    h1 = (jnp.dot(xn2, wmat(c_w1, Dp, Hp), preferred_element_type=jnp.float32)
          + vec(_R_BM1, Hp))
    h1 = _gelu(h1)
    mlp = (jnp.dot(h1, wmat(c_w2, Hp, Dp), preferred_element_type=jnp.float32)
           + vec(_R_BM2, Dp))

    o_ref[...] = (x1 + mlp).reshape(bb, N, Dp).astype(o_ref.dtype)


def _round_up(v, m):
    return ((v + m - 1) // m) * m


def outer_transformer_block(x, inner_patches, params, num_heads,
                            batch_block=None, single_buffer_params=False):
    """x: (B, N, D) f32, inner_patches: (B, Nc, Di) f32, Di == D.

    Returns the *padded* (B, N, Dp) output (Dp = round_up(D, 128)); the real
    result lives in lanes [0:D].  The depad slice is intentionally left to the
    consumer so it can be fused / done lazily instead of re-reading the whole
    output in a separate XLA copy.
    """
    B, N, D = x.shape
    _, Nc, Di = inner_patches.shape
    assert Di == D, "OuterTransformerBlock requires inner_dim == outer_dim"
    assert D % num_heads == 0
    hd = D // num_heads
    scale = float(hd) ** -0.5
    hidden = params["w1"].shape[0]

    # Default to >= 2 grid steps so both v7x TensorCores get work; single-TC
    # v5e/v6e just run the steps back-to-back (weights DMA'd only once).
    if batch_block is None:
        bb = B // 2 if (B >= 2 and B % 2 == 0) else B
    else:
        bb = batch_block
    assert B % bb == 0

    # Lane-dense padding (multiples of 128).  For production configs with
    # D/hidden >= 256 on v6e/v7x, bump this to 256 to fill the 256x256 MXU.
    Dp = _round_up(D, 128)
    KVp = _round_up(2 * D, 128)       # packed k|v output lanes
    Hp = _round_up(hidden, 128)
    Wr = max(Dp, Hp)                  # weight-slab rows
    Wv = max(Dp, KVp, Hp)             # bias-stack lanes

    f32 = jnp.float32

    # ---- packed weight slab: [wq | wk|wv | wo | wp | w1 | w2], (Wr, Wc) ----
    c_wq = 0
    c_wkv = c_wq + Dp
    c_wo = c_wkv + KVp
    c_wp = c_wo + Dp
    c_w1 = c_wp + Dp
    c_w2 = c_w1 + Hp
    Wc = c_w2 + Dp

    wcat = jnp.zeros((Wr, Wc), f32)
    # PyTorch (out, in) weights pre-transposed to (in, out); attention scale
    # folded into wq / bq (constant transform).
    wcat = wcat.at[:D, c_wq:c_wq + D].set(params["wq"].T.astype(f32) * scale)
    wcat = wcat.at[:D, c_wkv:c_wkv + D].set(params["wk"].T.astype(f32))
    wcat = wcat.at[:D, c_wkv + D:c_wkv + 2 * D].set(params["wv"].T.astype(f32))
    wcat = wcat.at[:D, c_wo:c_wo + D].set(params["wo"].T.astype(f32))
    wcat = wcat.at[:D, c_wp:c_wp + D].set(params["wp"].T.astype(f32))
    wcat = wcat.at[:D, c_w1:c_w1 + hidden].set(params["w1"].T.astype(f32))
    wcat = wcat.at[:hidden, c_w2:c_w2 + D].set(params["w2"].T.astype(f32))

    # ---- packed gamma/beta/bias stack (16, Wv); padded lanes stay zero ----
    vecs = jnp.zeros((_VEC_ROWS, Wv), f32)
    vecs = vecs.at[_R_G1, :D].set(params["g1"].astype(f32))
    vecs = vecs.at[_R_B1, :D].set(params["b1"].astype(f32))
    vecs = vecs.at[_R_BQ, :D].set(params["bq"].astype(f32) * scale)
    vecs = vecs.at[_R_BKV, :D].set(params["bk"].astype(f32))
    vecs = vecs.at[_R_BKV, D:2 * D].set(params["bv"].astype(f32))
    vecs = vecs.at[_R_BO, :D].set(params["bo"].astype(f32))
    vecs = vecs.at[_R_G2, :D].set(params["g2"].astype(f32))
    vecs = vecs.at[_R_B2, :D].set(params["b2"].astype(f32))
    vecs = vecs.at[_R_BM2, :D].set(params["bm2"].astype(f32))
    vecs = vecs.at[_R_G3, :D].set(params["g3"].astype(f32))
    vecs = vecs.at[_R_B3, :D].set(params["b3"].astype(f32))
    vecs = vecs.at[_R_BP, :D].set(params["bp"].astype(f32))
    vecs = vecs.at[_R_BM1, :hidden].set(params["bm1"].astype(f32))

    xp = jnp.pad(x.astype(f32), ((0, 0), (0, 0), (0, Dp - D)))
    ipp = jnp.pad(inner_patches.astype(f32), ((0, 0), (0, 0), (0, Dp - D)))

    def const_spec(a):
        # Grid-invariant input; optionally single-buffered for scaled-up
        # configs on v7x's 64 MiB VMEM (irrelevant at this toy size).
        if single_buffer_params:
            return pl.BlockSpec(a.shape, lambda i: (0, 0),
                                pipeline_mode=pl.Buffered(1))
        return pl.BlockSpec(a.shape, lambda i: (0, 0))

    in_specs = [
        pl.BlockSpec((bb, N, Dp), lambda i: (i, 0, 0)),
        pl.BlockSpec((bb, Nc, Dp), lambda i: (i, 0, 0)),
        const_spec(wcat),
        const_spec(vecs),
    ]
    out_spec = pl.BlockSpec((bb, N, Dp), lambda i: (i, 0, 0))

    # Advisory cost estimate (real, unpadded op counts).
    flops = 2 * B * (Nc * D * D             # inner proj
                     + N * D * D            # q
                     + Nc * D * (2 * D)     # packed k|v
                     + 2 * N * Nc * D       # scores + p@v
                     + N * D * D            # out proj
                     + 2 * N * D * hidden)  # mlp
    transc = B * (num_heads * N * Nc + N * hidden + 3 * N + Nc)
    bytes_acc = 4 * (x.size + inner_patches.size + B * N * Dp
                     + int(wcat.size) + int(vecs.size))
    cost = pl.CostEstimate(flops=int(flops), transcendentals=int(transc),
                           bytes_accessed=int(bytes_acc))

    # VMEM limit from actual padded buffer sizes (keeps headroom on v7x 64 MiB).
    blk_bytes = 4 * (bb * N * Dp + bb * Nc * Dp)
    const_bytes = 4 * (int(wcat.size) + int(vecs.size))
    out_blk = 4 * bb * N * Dp
    interm = 4 * (bb * N * (6 * Dp + 2 * Hp) + bb * Nc * (2 * Dp + KVp))
    need = (2 * blk_bytes
            + (1 if single_buffer_params else 2) * const_bytes
            + 2 * out_blk + interm + (4 << 20))
    vmem_limit = int(min(40 << 20, max(16 << 20, need)))

    out = pl.pallas_call(
        functools.partial(_outer_block_kernel, num_heads, D, KVp, Hp),
        out_shape=jax.ShapeDtypeStruct((B, N, Dp), x.dtype),
        grid_spec=pltpu.PrefetchScalarGridSpec(
            num_scalar_prefetch=0,
            grid=(B // bb,),
            in_specs=in_specs,
            out_specs=out_spec,
        ),
        compiler_params=pltpu.CompilerParams(
            dimension_semantics=("parallel",),
            vmem_limit_bytes=vmem_limit),
        cost_estimate=cost,
    )(xp, ipp, wcat, vecs)
    return out  # padded (B, N, Dp); real data in lanes [0:D]


# ------------------------- pure-JAX reference -------------------------------
def reference(x, ip, P, num_heads):
    def ln(t, g, b):
        mu = t.mean(-1, keepdims=True)
        var = ((t - mu) ** 2).mean(-1, keepdims=True)
        return (t - mu) / jnp.sqrt(var + EPS) * g + b

    B, N, D = x.shape
    H, hd = num_heads, D // num_heads

    inner_proj = ln(ip, P["g3"], P["b3"]) @ P["wp"].T + P["bp"]
    xn1 = ln(x, P["g1"], P["b1"])
    q = (xn1 @ P["wq"].T + P["bq"]).reshape(B, N, H, hd).transpose(0, 2, 1, 3)
    k = (inner_proj @ P["wk"].T + P["bk"]).reshape(B, -1, H, hd).transpose(0, 2, 1, 3)
    v = (inner_proj @ P["wv"].T + P["bv"]).reshape(B, -1, H, hd).transpose(0, 2, 1, 3)
    s = jnp.einsum("bhqd,bhkd->bhqk", q, k) * (float(hd) ** -0.5)
    p = jax.nn.softmax(s, axis=-1)
    o = jnp.einsum("bhqk,bhkd->bhqd", p, v).transpose(0, 2, 1, 3).reshape(B, N, D)
    x1 = x + (o @ P["wo"].T + P["bo"])

    xn2 = ln(x1, P["g2"], P["b2"])
    h = xn2 @ P["w1"].T + P["bm1"]
    h = 0.5 * h * (1.0 + jax.scipy.special.erf(h / jnp.sqrt(2.0)))  # exact GELU
    return x1 + (h @ P["w2"].T + P["bm2"])


# ------------------------------- main ----------------------------------------
if __name__ == "__main__":
    B, N, Nc = 2, 8, 8
    outer_dim = inner_dim = 32        # must be equal (see layout comment)
    num_heads = 4
    hidden = 4 * outer_dim
    D = outer_dim

    key = jax.random.PRNGKey(0)
    ks = jax.random.split(key, 32)

    def w(k, shape, scale=0.05):
        return scale * jax.random.normal(k, shape, dtype=jnp.float32)

    params = dict(
        g1=1.0 + w(ks[0], (D,), 0.1), b1=w(ks[1], (D,), 0.1),
        wq=w(ks[2], (D, D)), bq=w(ks[3], (D,), 0.01),
        wk=w(ks[4], (D, D)), bk=w(ks[5], (D,), 0.01),
        wv=w(ks[6], (D, D)), bv=w(ks[7], (D,), 0.01),
        wo=w(ks[8], (D, D)), bo=w(ks[9], (D,), 0.01),
        g2=1.0 + w(ks[10], (D,), 0.1), b2=w(ks[11], (D,), 0.1),
        w1=w(ks[12], (hidden, D)), bm1=w(ks[13], (hidden,), 0.01),
        w2=w(ks[14], (D, hidden)), bm2=w(ks[15], (D,), 0.01),
        g3=1.0 + w(ks[16], (D,), 0.1), b3=w(ks[17], (D,), 0.1),
        wp=w(ks[18], (outer_dim, inner_dim)), bp=w(ks[19], (outer_dim,), 0.01),
    )

    x = jax.random.normal(ks[20], (B, N, D), dtype=jnp.float32)
    inner_patches = jax.random.normal(ks[21], (B, Nc, inner_dim), dtype=jnp.float32)

    out_padded = outer_transformer_block(x, inner_patches, params, num_heads)
    out_padded = jax.block_until_ready(out_padded)
    out = out_padded[..., :D]   # consumer-side (lazy) depad for verification only

    ref = reference(x, inner_patches, params, num_heads)
    assert out.shape == ref.shape and out.dtype == ref.dtype
    # Tolerance 1e-3: approx-reciprocal softmax normalization (EUP) + erf poly.
    err = jnp.max(jnp.abs(out - ref))
    assert err < 1e-3, err

    print("KERNEL_OK")
</pallas_src>

<mosaic_0001>
module attributes {stable_mosaic.version = 11 : i64} {
  func.func @_outer_block_kernel(%arg0: i32, %arg1: memref<1x8x128xf32, #tpu.memory_space<vmem>>, %arg2: memref<1x8x128xf32, #tpu.memory_space<vmem>>, %arg3: memref<128x768xf32, #tpu.memory_space<vmem>>, %arg4: memref<16x128xf32, #tpu.memory_space<vmem>>, %arg5: memref<1x8x128xf32, #tpu.memory_space<vmem>>) attributes {dimension_semantics = [#tpu.dimension_semantics<parallel>], iteration_bounds = array<i64: 2>, scalar_prefetch = 0 : i64, scratch_operands = 0 : i64, tpu.core_type = #tpu.core_type<tc>, window_params = [{transform_indices = @transform_0, window_bounds = array<i64: 1, 8, 128>}, {transform_indices = @transform_1, window_bounds = array<i64: 1, 8, 128>}, {pipeline_mode = #tpu.pipeline_mode<synchronous>, transform_indices = @transform_2, window_bounds = array<i64: 128, 768>}, {pipeline_mode = #tpu.pipeline_mode<synchronous>, transform_indices = @transform_3, window_bounds = array<i64: 16, 128>}, {transform_indices = @transform_4, window_bounds = array<i64: 1, 8, 128>}]} {
    %c0 = arith.constant 0 : index
    %c0_0 = arith.constant 0 : index
    %c0_1 = arith.constant 0 : index
    %0 = vector.load %arg1[%c0, %c0_0, %c0_1] : memref<1x8x128xf32, #tpu.memory_space<vmem>>, vector<1x8x128xf32>
    %1 = vector.shape_cast %0 : vector<1x8x128xf32> to vector<8x128xf32>
    %c0_2 = arith.constant 0 : index
    %c0_3 = arith.constant 0 : index
    %c0_4 = arith.constant 0 : index
    %2 = vector.load %arg2[%c0_2, %c0_3, %c0_4] : memref<1x8x128xf32, #tpu.memory_space<vmem>>, vector<1x8x128xf32>
    %3 = vector.shape_cast %2 : vector<1x8x128xf32> to vector<8x128xf32>
    %c8 = arith.constant 8 : index
    %c0_5 = arith.constant 0 : index
    %4 = vector.load %arg4[%c8, %c0_5] : memref<16x128xf32, #tpu.memory_space<vmem>>, vector<1x128xf32>
    %c9 = arith.constant 9 : index
    %c0_6 = arith.constant 0 : index
    %5 = vector.load %arg4[%c9, %c0_6] : memref<16x128xf32, #tpu.memory_space<vmem>>, vector<1x128xf32>
    %cst = arith.constant dense<0.000000e+00> : vector<8xf32>
    %6 = vector.multi_reduction <add>, %3, %cst [1] : vector<8x128xf32> to vector<8xf32>
    %7 = vector.shape_cast %6 : vector<8xf32> to vector<8x1xf32>
    %8 = arith.mulf %3, %3 : vector<8x128xf32>
    %cst_7 = arith.constant dense<0.000000e+00> : vector<8xf32>
    %9 = vector.multi_reduction <add>, %8, %cst_7 [1] : vector<8x128xf32> to vector<8xf32>
    %10 = vector.shape_cast %9 : vector<8xf32> to vector<8x1xf32>
    %cst_8 = arith.constant 3.125000e-02 : f32
    %11 = vector.broadcast %cst_8 : f32 to vector<8x1xf32>
    %12 = arith.mulf %7, %11 : vector<8x1xf32>
    %cst_9 = arith.constant 3.125000e-02 : f32
    %13 = vector.broadcast %cst_9 : f32 to vector<8x1xf32>
    %14 = arith.mulf %10, %13 : vector<8x1xf32>
    %15 = arith.mulf %12, %12 : vector<8x1xf32>
    %16 = arith.subf %14, %15 : vector<8x1xf32>
    %17 = vector.broadcast %12 : vector<8x1xf32> to vector<8x128xf32>
    %18 = arith.subf %3, %17 : vector<8x128xf32>
    %cst_10 = arith.constant 9.99999974E-6 : f32
    %19 = vector.broadcast %cst_10 : f32 to vector<8x1xf32>
    %20 = arith.addf %16, %19 : vector<8x1xf32>
    %21 = math.rsqrt %20 : vector<8x1xf32>
    %22 = vector.broadcast %21 : vector<8x1xf32> to vector<8x128xf32>
    %23 = arith.mulf %18, %22 : vector<8x128xf32>
    %24 = vector.broadcast %4 : vector<1x128xf32> to vector<8x128xf32>
    %25 = arith.mulf %23, %24 : vector<8x128xf32>
    %26 = vector.broadcast %5 : vector<1x128xf32> to vector<8x128xf32>
    %27 = arith.addf %25, %26 : vector<8x128xf32>
    %c0_11 = arith.constant 0 : index
    %c384 = arith.constant 384 : index
    %28 = vector.load %arg3[%c0_11, %c384] : memref<128x768xf32, #tpu.memory_space<vmem>>, vector<128x128xf32>
    %cst_12 = arith.constant dense<0.000000e+00> : vector<8x128xf32>
    %29 = tpu.matmul %27, %28, %cst_12 {dimension_numbers = #tpu.dot_dimension_numbers<[1], [0], [0], [1], [0, 0, 1, 1], [], []>} : vector<8x128xf32>, vector<128x128xf32>, vector<8x128xf32> -> vector<8x128xf32>
    %c10 = arith.constant 10 : index
    %c0_13 = arith.constant 0 : index
    %30 = vector.load %arg4[%c10, %c0_13] : memref<16x128xf32, #tpu.memory_space<vmem>>, vector<1x128xf32>
    %31 = vector.broadcast %30 : vector<1x128xf32> to vector<8x128xf32>
    %32 = arith.addf %29, %31 : vector<8x128xf32>
    %c0_14 = arith.constant 0 : index
    %c0_15 = arith.constant 0 : index
    %33 = vector.load %arg4[%c0_14, %c0_15] : memref<16x128xf32, #tpu.memory_space<vmem>>, vector<1x128xf32>
    %c1 = arith.constant 1 : index
    %c0_16 = arith.constant 0 : index
    %34 = vector.load %arg4[%c1, %c0_16] : memref<16x128xf32, #tpu.memory_space<vmem>>, vector<1x128xf32>
    %cst_17 = arith.constant dense<0.000000e+00> : vector<8xf32>
    %35 = vector.multi_reduction <add>, %1, %cst_17 [1] : vector<8x128xf32> to vector<8xf32>
    %36 = vector.shape_cast %35 : vector<8xf32> to vector<8x1xf32>
    %37 = arith.mulf %1, %1 : vector<8x128xf32>
    %cst_18 = arith.constant dense<0.000000e+00> : vector<8xf32>
    %38 = vector.multi_reduction <add>, %37, %cst_18 [1] : vector<8x128xf32> to vector<8xf32>
    %39 = vector.shape_cast %38 : vector<8xf32> to vector<8x1xf32>
    %cst_19 = arith.constant 3.125000e-02 : f32
    %40 = vector.broadcast %cst_19 : f32 to vector<8x1xf32>
    %41 = arith.mulf %36, %40 : vector<8x1xf32>
    %cst_20 = arith.constant 3.125000e-02 : f32
    %42 = vector.broadcast %cst_20 : f32 to vector<8x1xf32>
    %43 = arith.mulf %39, %42 : vector<8x1xf32>
    %44 = arith.mulf %41, %41 : vector<8x1xf32>
    %45 = arith.subf %43, %44 : vector<8x1xf32>
    %46 = vector.broadcast %41 : vector<8x1xf32> to vector<8x128xf32>
    %47 = arith.subf %1, %46 : vector<8x128xf32>
    %cst_21 = arith.constant 9.99999974E-6 : f32
    %48 = vector.broadcast %cst_21 : f32 to vector<8x1xf32>
    %49 = arith.addf %45, %48 : vector<8x1xf32>
    %50 = math.rsqrt %49 : vector<8x1xf32>
    %51 = vector.broadcast %50 : vector<8x1xf32> to vector<8x128xf32>
    %52 = arith.mulf %47, %51 : vector<8x128xf32>
    %53 = vector.broadcast %33 : vector<1x128xf32> to vector<8x128xf32>
    %54 = arith.mulf %52, %53 : vector<8x128xf32>
    %55 = vector.broadcast %34 : vector<1x128xf32> to vector<8x128xf32>
    %56 = arith.addf %54, %55 : vector<8x128xf32>
    %c0_22 = arith.constant 0 : index
    %c0_23 = arith.constant 0 : index
    %57 = vector.load %arg3[%c0_22, %c0_23] : memref<128x768xf32, #tpu.memory_space<vmem>>, vector<128x128xf32>
    %cst_24 = arith.constant dense<0.000000e+00> : vector<8x128xf32>
    %58 = tpu.matmul %56, %57, %cst_24 {dimension_numbers = #tpu.dot_dimension_numbers<[1], [0], [0], [1], [0, 0, 1, 1], [], []>} : vector<8x128xf32>, vector<128x128xf32>, vector<8x128xf32> -> vector<8x128xf32>
    %c2 = arith.constant 2 : index
    %c0_25 = arith.constant 0 : index
    %59 = vector.load %arg4[%c2, %c0_25] : memref<16x128xf32, #tpu.memory_space<vmem>>, vector<1x128xf32>
    %60 = vector.broadcast %59 : vector<1x128xf32> to vector<8x128xf32>
    %61 = arith.addf %58, %60 : vector<8x128xf32>
    %c0_26 = arith.constant 0 : index
    %c128 = arith.constant 128 : index
    %62 = vector.load %arg3[%c0_26, %c128] : memref<128x768xf32, #tpu.memory_space<vmem>>, vector<128x128xf32>
    %cst_27 = arith.constant dense<0.000000e+00> : vector<8x128xf32>
    %63 = tpu.matmul %32, %62, %cst_27 {dimension_numbers = #tpu.dot_dimension_numbers<[1], [0], [0], [1], [0, 0, 1, 1], [], []>} : vector<8x128xf32>, vector<128x128xf32>, vector<8x128xf32> -> vector<8x128xf32>
    %c3 = arith.constant 3 : index
    %c0_28 = arith.constant 0 : index
    %64 = vector.load %arg4[%c3, %c0_28] : memref<16x128xf32, #tpu.memory_space<vmem>>, vector<1x128xf32>
    %65 = vector.broadcast %64 : vector<1x128xf32> to vector<8x128xf32>
    %66 = arith.addf %63, %65 : vector<8x128xf32>
    %67 = vector.extract_strided_slice %61 {offsets = [0, 0], sizes = [8, 8], strides = [1, 1]} : vector<8x128xf32> to vector<8x8xf32>
    %68 = vector.extract_strided_slice %66 {offsets = [0, 0], sizes = [8, 8], strides = [1, 1]} : vector<8x128xf32> to vector<8x8xf32>
    %cst_29 = arith.constant dense<0.000000e+00> : vector<8x8xf32>
    %69 = tpu.matmul %67, %68, %cst_29 {dimension_numbers = #tpu.dot_dimension_numbers<[1], [1], [0], [0], [0, 0, 1, 0], [], []>} : vector<8x8xf32>, vector<8x8xf32>, vector<8x8xf32> -> vector<8x8xf32>
    %70 = vector.extract_strided_slice %61 {offsets = [0, 8], sizes = [8, 8], strides = [1, 1]} : vector<8x128xf32> to vector<8x8xf32>
    %71 = vector.extract_strided_slice %66 {offsets = [0, 8], sizes = [8, 8], strides = [1, 1]} : vector<8x128xf32> to vector<8x8xf32>
    %cst_30 = arith.constant dense<0.000000e+00> : vector<8x8xf32>
    %72 = tpu.matmul %70, %71, %cst_30 {dimension_numbers = #tpu.dot_dimension_numbers<[1], [1], [0], [0], [0, 0, 1, 0], [], []>} : vector<8x8xf32>, vector<8x8xf32>, vector<8x8xf32> -> vector<8x8xf32>
    %73 = vector.extract_strided_slice %61 {offsets = [0, 16], sizes = [8, 8], strides = [1, 1]} : vector<8x128xf32> to vector<8x8xf32>
    %74 = vector.extract_strided_slice %66 {offsets = [0, 16], sizes = [8, 8], strides = [1, 1]} : vector<8x128xf32> to vector<8x8xf32>
    %cst_31 = arith.constant dense<0.000000e+00> : vector<8x8xf32>
    %75 = tpu.matmul %73, %74, %cst_31 {dimension_numbers = #tpu.dot_dimension_numbers<[1], [1], [0], [0], [0, 0, 1, 0], [], []>} : vector<8x8xf32>, vector<8x8xf32>, vector<8x8xf32> -> vector<8x8xf32>
    %76 = vector.extract_strided_slice %61 {offsets = [0, 24], sizes = [8, 8], strides = [1, 1]} : vector<8x128xf32> to vector<8x8xf32>
    %77 = vector.extract_strided_slice %66 {offsets = [0, 24], sizes = [8, 8], strides = [1, 1]} : vector<8x128xf32> to vector<8x8xf32>
    %cst_32 = arith.constant dense<0.000000e+00> : vector<8x8xf32>
    %78 = tpu.matmul %76, %77, %cst_32 {dimension_numbers = #tpu.dot_dimension_numbers<[1], [1], [0], [0], [0, 0, 1, 0], [], []>} : vector<8x8xf32>, vector<8x8xf32>, vector<8x8xf32> -> vector<8x8xf32>
    %79 = tpu.concatenate %69, %72, %75, %78 in 0 : vector<8x8xf32>, vector<8x8xf32>, vector<8x8xf32>, vector<8x8xf32> -> vector<32x8xf32>
    %cst_33 = arith.constant dense<0xFF800000> : vector<32xf32>
    %80 = vector.multi_reduction <maximumf>, %79, %cst_33 [1] : vector<32x8xf32> to vector<32xf32>
    %81 = vector.shape_cast %80 : vector<32xf32> to vector<32x1xf32>
    %82 = vector.broadcast %81 : vector<32x1xf32> to vector<32x8xf32>
    %83 = arith.subf %79, %82 : vector<32x8xf32>
    %84 = math.exp %83 : vector<32x8xf32>
    %cst_34 = arith.constant dense<0.000000e+00> : vector<32xf32>
    %85 = vector.multi_reduction <add>, %84, %cst_34 [1] : vector<32x8xf32> to vector<32xf32>
    %86 = vector.shape_cast %85 : vector<32xf32> to vector<32x1xf32>
    %87 = tpu.reciprocal %86 {approx = true} : vector<32x1xf32> -> vector<32x1xf32>
    %88 = vector.broadcast %87 : vector<32x1xf32> to vector<32x8xf32>
    %89 = arith.mulf %84, %88 : vector<32x8xf32>
    %90 = vector.extract_strided_slice %89 {offsets = [0, 0], sizes = [8, 8], strides = [1, 1]} : vector<32x8xf32> to vector<8x8xf32>
    %91 = vector.extract_strided_slice %66 {offsets = [0, 32], sizes = [8, 8], strides = [1, 1]} : vector<8x128xf32> to vector<8x8xf32>
    %cst_35 = arith.constant dense<0.000000e+00> : vector<8x8xf32>
    %92 = tpu.matmul %90, %91, %cst_35 {dimension_numbers = #tpu.dot_dimension_numbers<[1], [0], [0], [1], [0, 0, 1, 1], [], []>} : vector<8x8xf32>, vector<8x8xf32>, vector<8x8xf32> -> vector<8x8xf32>
    %93 = vector.extract_strided_slice %89 {offsets = [8, 0], sizes = [8, 8], strides = [1, 1]} : vector<32x8xf32> to vector<8x8xf32>
    %94 = vector.extract_strided_slice %66 {offsets = [0, 40], sizes = [8, 8], strides = [1, 1]} : vector<8x128xf32> to vector<8x8xf32>
    %cst_36 = arith.constant dense<0.000000e+00> : vector<8x8xf32>
    %95 = tpu.matmul %93, %94, %cst_36 {dimension_numbers = #tpu.dot_dimension_numbers<[1], [0], [0], [1], [0, 0, 1, 1], [], []>} : vector<8x8xf32>, vector<8x8xf32>, vector<8x8xf32> -> vector<8x8xf32>
    %96 = vector.extract_strided_slice %89 {offsets = [16, 0], sizes = [8, 8], strides = [1, 1]} : vector<32x8xf32> to vector<8x8xf32>
    %97 = vector.extract_strided_slice %66 {offsets = [0, 48], sizes = [8, 8], strides = [1, 1]} : vector<8x128xf32> to vector<8x8xf32>
    %cst_37 = arith.constant dense<0.000000e+00> : vector<8x8xf32>
    %98 = tpu.matmul %96, %97, %cst_37 {dimension_numbers = #tpu.dot_dimension_numbers<[1], [0], [0], [1], [0, 0, 1, 1], [], []>} : vector<8x8xf32>, vector<8x8xf32>, vector<8x8xf32> -> vector<8x8xf32>
    %99 = vector.extract_strided_slice %89 {offsets = [24, 0], sizes = [8, 8], strides = [1, 1]} : vector<32x8xf32> to vector<8x8xf32>
    %100 = vector.extract_strided_slice %66 {offsets = [0, 56], sizes = [8, 8], strides = [1, 1]} : vector<8x128xf32> to vector<8x8xf32>
    %cst_38 = arith.constant dense<0.000000e+00> : vector<8x8xf32>
    %101 = tpu.matmul %99, %100, %cst_38 {dimension_numbers = #tpu.dot_dimension_numbers<[1], [0], [0], [1], [0, 0, 1, 1], [], []>} : vector<8x8xf32>, vector<8x8xf32>, vector<8x8xf32> -> vector<8x8xf32>
    %cst_39 = arith.constant 0.000000e+00 : f32
    %102 = vector.broadcast %cst_39 : f32 to vector<8x96xf32>
    %103 = tpu.concatenate %92, %95, %98, %101, %102 in 1 : vector<8x8xf32>, vector<8x8xf32>, vector<8x8xf32>, vector<8x8xf32>, vector<8x96xf32> -> vector<8x128xf32>
    %c0_40 = arith.constant 0 : index
    %c256 = arith.constant 256 : index
    %104 = vector.load %arg3[%c0_40, %c256] : memref<128x768xf32, #tpu.memory_space<vmem>>, vector<128x128xf32>
    %cst_41 = arith.constant dense<0.000000e+00> : vector<8x128xf32>
    %105 = tpu.matmul %103, %104, %cst_41 {dimension_numbers = #tpu.dot_dimension_numbers<[1], [0], [0], [1], [0, 0, 1, 1], [], []>} : vector<8x128xf32>, vector<128x128xf32>, vector<8x128xf32> -> vector<8x128xf32>
    %c4 = arith.constant 4 : index
    %c0_42 = arith.constant 0 : index
    %106 = vector.load %arg4[%c4, %c0_42] : memref<16x128xf32, #tpu.memory_space<vmem>>, vector<1x128xf32>
    %107 = vector.broadcast %106 : vector<1x128xf32> to vector<8x128xf32>
    %108 = arith.addf %105, %107 : vector<8x128xf32>
    %109 = arith.addf %1, %108 : vector<8x128xf32>
    %c5 = arith.constant 5 : index
    %c0_43 = arith.constant 0 : index
    %110 = vector.load %arg4[%c5, %c0_43] : memref<16x128xf32, #tpu.memory_space<vmem>>, vector<1x128xf32>
    %c6 = arith.constant 6 : index
    %c0_44 = arith.constant 0 : index
    %111 = vector.load %arg4[%c6, %c0_44] : memref<16x128xf32, #tpu.memory_space<vmem>>, vector<1x128xf32>
    %cst_45 = arith.constant dense<0.000000e+00> : vector<8xf32>
    %112 = vector.multi_reduction <add>, %109, %cst_45 [1] : vector<8x128xf32> to vector<8xf32>
    %113 = vector.shape_cast %112 : vector<8xf32> to vector<8x1xf32>
    %114 = arith.mulf %109, %109 : vector<8x128xf32>
    %cst_46 = arith.constant dense<0.000000e+00> : vector<8xf32>
    %115 = vector.multi_reduction <add>, %114, %cst_46 [1] : vector<8x128xf32> to vector<8xf32>
    %116 = vector.shape_cast %115 : vector<8xf32> to vector<8x1xf32>
    %cst_47 = arith.constant 3.125000e-02 : f32
    %117 = vector.broadcast %cst_47 : f32 to vector<8x1xf32>
    %118 = arith.mulf %113, %117 : vector<8x1xf32>
    %cst_48 = arith.constant 3.125000e-02 : f32
    %119 = vector.broadcast %cst_48 : f32 to vector<8x1xf32>
    %120 = arith.mulf %116, %119 : vector<8x1xf32>
    %121 = arith.mulf %118, %118 : vector<8x1xf32>
    %122 = arith.subf %120, %121 : vector<8x1xf32>
    %123 = vector.broadcast %118 : vector<8x1xf32> to vector<8x128xf32>
    %124 = arith.subf %109, %123 : vector<8x128xf32>
    %cst_49 = arith.constant 9.99999974E-6 : f32
    %125 = vector.broadcast %cst_49 : f32 to vector<8x1xf32>
    %126 = arith.addf %122, %125 : vector<8x1xf32>
    %127 = math.rsqrt %126 : vector<8x1xf32>
    %128 = vector.broadcast %127 : vector<8x1xf32> to vector<8x128xf32>
    %129 = arith.mulf %124, %128 : vector<8x128xf32>
    %130 = vector.broadcast %110 : vector<1x128xf32> to vector<8x128xf32>
    %131 = arith.mulf %129, %130 : vector<8x128xf32>
    %132 = vector.broadcast %111 : vector<1x128xf32> to vector<8x128xf32>
    %133 = arith.addf %131, %132 : vector<8x128xf32>
    %c0_50 = arith.constant 0 : index
    %c512 = arith.constant 512 : index
    %134 = vector.load %arg3[%c0_50, %c512] : memref<128x768xf32, #tpu.memory_space<vmem>>, vector<128x128xf32>
    %cst_51 = arith.constant dense<0.000000e+00> : vector<8x128xf32>
    %135 = tpu.matmul %133, %134, %cst_51 {dimension_numbers = #tpu.dot_dimension_numbers<[1], [0], [0], [1], [0, 0, 1, 1], [], []>} : vector<8x128xf32>, vector<128x128xf32>, vector<8x128xf32> -> vector<8x128xf32>
    %c11 = arith.constant 11 : index
    %c0_52 = arith.constant 0 : index
    %136 = vector.load %arg4[%c11, %c0_52] : memref<16x128xf32, #tpu.memory_space<vmem>>, vector<1x128xf32>
    %137 = vector.broadcast %136 : vector<1x128xf32> to vector<8x128xf32>
    %138 = arith.addf %135, %137 : vector<8x128xf32>
    %cst_53 = arith.constant 5.000000e-01 : f32
    %139 = vector.broadcast %cst_53 : f32 to vector<8x128xf32>
    %140 = arith.mulf %139, %138 : vector<8x128xf32>
    %cst_54 = arith.constant 0.707106769 : f32
    %141 = vector.broadcast %cst_54 : f32 to vector<8x128xf32>
    %142 = arith.mulf %138, %141 : vector<8x128xf32>
    %143 = math.absf %142 : vector<8x128xf32>
    %cst_55 = arith.constant 0.327591091 : f32
    %144 = vector.broadcast %cst_55 : f32 to vector<8x128xf32>
    %145 = arith.mulf %144, %143 : vector<8x128xf32>
    %cst_56 = arith.constant 1.000000e+00 : f32
    %146 = vector.broadcast %cst_56 : f32 to vector<8x128xf32>
    %147 = arith.addf %146, %145 : vector<8x128xf32>
    %cst_57 = arith.constant 1.000000e+00 : f32
    %148 = vector.broadcast %cst_57 : f32 to vector<8x128xf32>
    %149 = arith.divf %148, %147 : vector<8x128xf32>
    %cst_58 = arith.constant 1.06140542 : f32
    %150 = vector.broadcast %cst_58 : f32 to vector<8x128xf32>
    %151 = arith.mulf %150, %149 : vector<8x128xf32>
    %cst_59 = arith.constant 1.45315206 : f32
    %152 = vector.broadcast %cst_59 : f32 to vector<8x128xf32>
    %153 = arith.subf %151, %152 : vector<8x128xf32>
    %154 = arith.mulf %153, %149 : vector<8x128xf32>
    %cst_60 = arith.constant 1.42141378 : f32
    %155 = vector.broadcast %cst_60 : f32 to vector<8x128xf32>
    %156 = arith.addf %154, %155 : vector<8x128xf32>
    %157 = arith.mulf %156, %149 : vector<8x128xf32>
    %cst_61 = arith.constant 0.284496725 : f32
    %158 = vector.broadcast %cst_61 : f32 to vector<8x128xf32>
    %159 = arith.subf %157, %158 : vector<8x128xf32>
    %160 = arith.mulf %159, %149 : vector<8x128xf32>
    %cst_62 = arith.constant 0.254829586 : f32
    %161 = vector.broadcast %cst_62 : f32 to vector<8x128xf32>
    %162 = arith.addf %160, %161 : vector<8x128xf32>
    %163 = arith.mulf %162, %149 : vector<8x128xf32>
    %cst_63 = arith.constant 0.000000e+00 : f32
    %164 = vector.broadcast %cst_63 : f32 to vector<8x128xf32>
    %165 = arith.subf %164, %143 : vector<8x128xf32>
    %166 = arith.mulf %165, %143 : vector<8x128xf32>
    %167 = math.exp %166 : vector<8x128xf32>
    %168 = arith.mulf %163, %167 : vector<8x128xf32>
    %cst_64 = arith.constant 1.000000e+00 : f32
    %169 = vector.broadcast %cst_64 : f32 to vector<8x128xf32>
    %170 = arith.subf %169, %168 : vector<8x128xf32>
    %cst_65 = arith.constant 0.000000e+00 : f32
    %171 = vector.broadcast %cst_65 : f32 to vector<8x128xf32>
    %172 = arith.cmpf olt, %142, %171 : vector<8x128xf32>
    %cst_66 = arith.constant 0.000000e+00 : f32
    %173 = vector.broadcast %cst_66 : f32 to vector<8x128xf32>
    %174 = arith.subf %173, %170 : vector<8x128xf32>
    %175 = arith.select %172, %174, %170 : vector<8x128xi1>, vector<8x128xf32>
    %cst_67 = arith.constant 1.000000e+00 : f32
    %176 = vector.broadcast %cst_67 : f32 to vector<8x128xf32>
    %177 = arith.addf %176, %175 : vector<8x128xf32>
    %178 = arith.mulf %140, %177 : vector<8x128xf32>
    %c0_68 = arith.constant 0 : index
    %c640 = arith.constant 640 : index
    %179 = vector.load %arg3[%c0_68, %c640] : memref<128x768xf32, #tpu.memory_space<vmem>>, vector<128x128xf32>
    %cst_69 = arith.constant dense<0.000000e+00> : vector<8x128xf32>
    %180 = tpu.matmul %178, %179, %cst_69 {dimension_numbers = #tpu.dot_dimension_numbers<[1], [0], [0], [1], [0, 0, 1, 1], [], []>} : vector<8x128xf32>, vector<128x128xf32>, vector<8x128xf32> -> vector<8x128xf32>
    %c7 = arith.constant 7 : index
    %c0_70 = arith.constant 0 : index
    %181 = vector.load %arg4[%c7, %c0_70] : memref<16x128xf32, #tpu.memory_space<vmem>>, vector<1x128xf32>
    %182 = vector.broadcast %181 : vector<1x128xf32> to vector<8x128xf32>
    %183 = arith.addf %180, %182 : vector<8x128xf32>
    %184 = arith.addf %109, %183 : vector<8x128xf32>
    %185 = vector.shape_cast %184 : vector<8x128xf32> to vector<1x8x128xf32>
    %c0_71 = arith.constant 0 : index
    %c0_72 = arith.constant 0 : index
    %c0_73 = arith.constant 0 : index
    %186 = vector.load %arg5[%c0_71, %c0_72, %c0_73] : memref<1x8x128xf32, #tpu.memory_space<vmem>>, vector<1x8x128xf32>
    tpu.vector_store %arg5[%c0_71, %c0_72, %c0_73], %185 {strides = array<i32>} : memref<1x8x128xf32, #tpu.memory_space<vmem>>, vector<1x8x128xf32>,
    return
  }
  func.func @transform_0(%arg0: i32) -> (i32, i32, i32) {
    %c0_i32 = arith.constant 0 : i32
    %c0_i32_0 = arith.constant 0 : i32
    %c0_i32_1 = arith.constant 0 : i32
    return %arg0, %c0_i32, %c0_i32_0 : i32, i32, i32
  }
  func.func @transform_1(%arg0: i32) -> (i32, i32, i32) {
    %c0_i32 = arith.constant 0 : i32
    %c0_i32_0 = arith.constant 0 : i32
    %c0_i32_1 = arith.constant 0 : i32
    return %arg0, %c0_i32, %c0_i32_0 : i32, i32, i32
  }
  func.func @transform_2(%arg0: i32) -> (i32, i32) {
    %c0_i32 = arith.constant 0 : i32
    %c0_i32_0 = arith.constant 0 : i32
    %c0_i32_1 = arith.constant 0 : i32
    return %c0_i32, %c0_i32_0 : i32, i32
  }
  func.func @transform_3(%arg0: i32) -> (i32, i32) {
    %c0_i32 = arith.constant 0 : i32
    %c0_i32_0 = arith.constant 0 : i32
    %c0_i32_1 = arith.constant 0 : i32
    return %c0_i32, %c0_i32_0 : i32, i32
  }
  func.func @transform_4(%arg0: i32) -> (i32, i32, i32) {
    %c0_i32 = arith.constant 0 : i32
    %c0_i32_0 = arith.constant 0 : i32
    %c0_i32_1 = arith.constant 0 : i32
    return %arg0, %c0_i32, %c0_i32_0 : i32, i32, i32
  }
}

</mosaic_0001>

<bundles_post_ra>
// kernel: tpu_custom_call.1
= control target key start
LH: loop header
LB: loop body
LE: loop exit
PB: predicated region body
PF: predicated region fallthrough
CT: control target
= control target key end

     0   :  { %s1686_s0 = inlined_call_operand.hbm [shape: f32[2,8,128], index: 0, kind: input, shape index: {}]   ;;  %s1687_s1 = inlined_call_operand.hbm [shape: f32[2,8,128], index: 1, kind: input, shape index: {}]   ;;  %s1688_s2 = inlined_call_operand.hbm [shape: f32[128,768], index: 2, kind: input, shape index: {}]   ;;  %s1689_s3 = inlined_call_operand.hbm [shape: f32[16,128], index: 3, kind: input, shape index: {}]   ;;  %s1690_s4 = inlined_call_operand.hbm [shape: f32[2,8,128], index: 4, kind: output, shape index: {}]  }
   0x1   :  { %1691 = sst [smem:[#allocation17_spill]] %s1688_s2 }
   0x2   :  { %1692 = sst [smem:[#allocation18_spill]] %s1689_s3 }
   0x3   :  { %9 = vsyncpa [#allocation3], 0 }
   0x4   :  { %11 = vsyncpa [#allocation3 + $0x1], 0 }
   0x5   :  { %12 = vsyncpa [#allocation6], 0 }
   0x6   :  { %14 = vsyncpa [#allocation6 + $0x1], 0 }
   0x7   :  { %15 = vsyncpa [#allocation9], 0 }
   0x8   :  { %16 = vsyncpa [#allocation4], 0 }
   0x9   :  { %18 = vsyncpa [#allocation4 + $0x1], 0  ;;  %s1449_s15 = smov 0   ;;  %s1451_s16 = smov 0  }
   0xa   :  { %s1453_s17 = smov 0   ;;  %s1455_s18 = smov 0  }
   0xb LB: > { %s1693_s2 = sld [smem:[#allocation17_spill]]  ;;  %s1473_s22 = sadd.s32 4294967295, %s1406_s18   ;;  %s1406_s18 = sphi %s1455_s18, %s1707_s18   ;;  %s1402_s17 = sphi %s1453_s17, %s1706_s17   ;;  %s1398_s16 = sphi %s1451_s16, %s1705_s16   ;;  %s1394_s15 = sphi %s1449_s15, %s1704_s15  }
   0xc   : > { %p1051_p0 = scmp.ge.s32.totalorder %s1406_s18, 1  ;;  %p45_p1 = scmp.eq.s32.totalorder %s1473_s22, 0 }
   0xd   : > { %p149_p2 = scmp.lt.s32.totalorder %s1406_s18, 3  ;;  %s1408_s24 = smov [#allocation7]  }
   0xe   : > { %s162_s25 = sshll.u32 %s1408_s24, 4  ;;  %s1695_s3 = sld [smem:[#allocation18_spill]]  ;;  %s163_s25 = int_to_ptr.vmem [resolvable:$true] %s162_s25 }
   0xf   : > { %p1478_p3 = pnand %p1051_p0, %p149_p2  ;;  %s1409_s29 = smov [#allocation8]  }
  0x10   : > { %s176_s30 = sshll.u32 %s1409_s29, 4  ;;  %s1410_s5 = smov 768   ;;  %s177_s30 = int_to_ptr.vmem [resolvable:$true] %s176_s30 }
  0x11   : > { %s160_s21 = sshll.u32 %s1693_s2, 4  ;;  %p1098_p4 = pneg %p1478_p3  ;;  %s161_s21 = int_to_ptr.hbm [resolvable:$true] %s160_s21 }
  0x12   : > { %s1411_s6 = smov 48   ;;  %s1412_s7 = smov 128  }
  0x13   : > { %p1099_p6 = pnand %p1098_p4, %p45_p1  ;;  %s1413_s8 = smov 8  }
  0x14   : > { %s174_s28 = sshll.u32 %s1695_s3, 4  ;;  %s1050_s9 = sadd.s32 4294967294, %s1406_s18   ;;  %s175_s28 = int_to_ptr.hbm [resolvable:$true] %s174_s28 }
  0x15   : > { %1101 = dma.hbm_to_vmem [thread:$0]  (!%p1099_p6), %s161_s21, 12288, %s163_s25, [#allocation6], %s1410_s5, %s1410_s5, %s1411_s6  }
  0x16   : > { %1104 = dma.hbm_to_vmem [thread:$0]  (!%p1099_p6), %s175_s28, 256, %s177_s30, [#allocation9], %s1412_s7, %s1412_s7, %s1413_s8  }
  0x17   : > { %s1492_s10 = sadd.s32 1, %s1406_s18   ;;  %s31_s12 = sadd.s32 1, %s1402_s17 }
  0x18   : > { %s28_s11 = ssub.s32 %s1406_s18, %s1492_s10  ;;  %p38_p8 = scmp.ne.s32.totalorder %s1402_s17, %s1398_s16 }
  0x19   : > { %p29_p7 = scmp.eq.s32.totalorder %s28_s11, 0  ;;  %p39_p9 = scmp.eq.s32.totalorder %s1406_s18, 0 }
  0x1a   : > { %p44_p10 = scmp.ne.s32.totalorder %s1398_s16, %s1394_s15  ;;  %p136_p13 = scmp.eq.s32.totalorder %s1473_s22, 1 }
  0x1b   : > { %s1503_s13 = scalar_select %p29_p7, %s1402_s17, %s31_s12  }
  0x1c   : > { %p1505_p11 = por %p39_p9, %p38_p8  ;;  %p1511_p12 = por %p45_p1, %p44_p10 }
  0x1d   : > { %1696 = sst [smem:[#allocation16_spill]] %s1503_s13  ;;  %p142_p0 = scmp.eq.s32.totalorder %s1050_s9, 1 }
  0x1e   : > { %p1118_p2 = scmp.lt.s32.totalorder %s1406_s18, 2  ;;  %s190_s20 = sand.u32 1, %s1402_s17  }
  0x1f   : > { %p1518_p4 = por %p136_p13, %p38_p8  ;;  %p1522_p6 = por %p142_p0, %p44_p10 }
  0x20   : > { %s1526_s25 = sshll.u32 %s190_s20, 3  ;;  %s1056_s26 = sshll.u32 %s1406_s18, 3 }
  0x21   : > { %s198_s29 = scalar_lea.hbm %s1686_s0, %s1056_s26  ;;  %s194_s30 = scalar_lea.vmem [#allocation2], %s1526_s25 }
  0x22   : > { %s202_s5 = sshll.u32 %s194_s30, 4  ;;  %s200_s6 = sshll.u32 %s198_s29, 4  ;;  %s203_s5 = int_to_ptr.vmem [resolvable:$true] %s202_s5  ;;  %s201_s6 = int_to_ptr.hbm [resolvable:$true] %s200_s6 }
  0x23   : > { %p1535_p7 = pnand %p1118_p2, %p1505_p11  ;;  %s217_s11 = scalar_lea.hbm %s1687_s1, %s1056_s26 }
  0x24   : > { %s209_s12 = sand.u32 1, %s1406_s18   ;;  %s191_s2 = scalar_lea.sflag [#allocation3], %s190_s20 }
  0x25   : > { %s1268_s27 = sshra.s32 %s201_s6, 4  ;;  %p1272_p9 = pneg %p1535_p7  ;;  %s1269_s27 = int_to_ptr.hbm [resolvable:$true] %s1268_s27 }
  0x26   : > { %s1270_s28 = scalar_lea.hbm %s1269_s27, 8  ;;  %s1275_s30 = scalar_lea.hbm %s1686_s0, 16 }
  0x27   : > { %p1271_p8 = scmp.ne.s32.totalorder %s1269_s27, %s1270_s28  ;;  %p1276_p13 = scmp.lt.s32.totalorder %s1269_s27, %s1686_s0 }
  0x28   : > { %p1277_p0 = scmp.lt.s32.totalorder %s1275_s30, %s1270_s28 }
  0x29   : > { %p1273_p10 = pnand %p1272_p9, %p1271_p8 }
  0x2a   : > { %p1278_p2 = por %p1277_p0, %p1276_p13 }
  0x2b   : > { %p1274_p11 = pneg %p1273_p10 }
  0x2d   : > { %p1279_p5 = pnand %p1278_p2, %p1274_p11 }
  0x2f   : > { %1282 = shalt.err (!%p1279_p5)
}
  0x30   : > { %1108 = dma.hbm_to_vmem [thread:$0]  (!%p1535_p7), %s201_s6, 128, %s203_s5, %s191_s2  }
  0x31   : > { %s219_s20 = sshll.u32 %s217_s11, 4  ;;  %s213_s26 = scalar_lea.vmem [#allocation5], %s1526_s25  ;;  %s220_s20 = int_to_ptr.hbm [resolvable:$true] %s219_s20 }
  0x32   : > { %s221_s3 = sshll.u32 %s213_s26, 4  ;;  %s210_s14 = scalar_lea.sflag [#allocation6], %s209_s12  ;;  %s222_s3 = int_to_ptr.vmem [resolvable:$true] %s221_s3 }
  0x33   : > { %s1298_s29 = sshra.s32 %s220_s20, 4  ;;  %s1305_s30 = scalar_lea.hbm %s1687_s1, 16  ;;  %s1299_s29 = int_to_ptr.hbm [resolvable:$true] %s1298_s29 }
  0x34   : > { %s1300_s13 = scalar_lea.hbm %s1299_s29, 8  ;;  %p1306_p5 = scmp.lt.s32.totalorder %s1299_s29, %s1687_s1 }
  0x35   : > { %p1301_p8 = scmp.ne.s32.totalorder %s1299_s29, %s1300_s13  ;;  %p1307_p13 = scmp.lt.s32.totalorder %s1305_s30, %s1300_s13 }
  0x37   : > { %p1303_p10 = pnand %p1301_p8, %p1272_p9  ;;  %p1308_p0 = por %p1307_p13, %p1306_p5 }
  0x39   : > { %p1304_p11 = pneg %p1303_p10 }
  0x3b   : > { %p1309_p2 = pnand %p1308_p0, %p1304_p11 }
  0x3d   : > { %1312 = shalt.err (!%p1309_p2)
}
  0x3e   : > { %1111 = dma.hbm_to_vmem [thread:$0]  (!%p1535_p7), %s220_s20, 128, %s222_s3, %s210_s14  }
  0x3f   : > { %230 = sbr.rel (%p1478_p3) target bundleno = 1863 (0x747), region = 36  ;;  %s1571_s25 = sand.u32 (!%p1478_p3), 1, %s1398_s16  }
  0x40   : > { %s1574_s5 = sshll.u32 (!%p1478_p3), %s1571_s25, 3  ;;  %s233_s6 = scalar_lea.sflag (!%p1478_p3), [#allocation3], %s1571_s25 }
  0x41   : > { %s236_s13 = scalar_lea.vmem (!%p1478_p3), [#allocation2], %s1574_s5 }
  0x44   : > { %1373 = dma.done.wait (%p1511_p12), %s233_s6, 128  }
  0x45   : > { %1375 = vsyncadd (%p1511_p12), %s233_s6, 4294967168  ;;  %s242_s3 = sand.u32 1, %s1473_s22   ;;  %s246_s7 = scalar_lea.vmem [#allocation5], %s1574_s5 }
  0x46   : > { %s243_s23 = scalar_lea.sflag [#allocation6], %s242_s3 }
  0x47   : > { %1377 = dma.done.wait (%p1511_p12), %s243_s23, 128  }
  0x48   : > { %1379 = vsyncadd (%p1511_p12), %s243_s23, 4294967168 }
  0x49   : > { %1381 = dma.done.wait (%p45_p1), [#allocation6], 12288  }
  0x4a   : > { %1383 = vsyncadd (%p45_p1), [#allocation6], 4294955008 }
  0x4b   : > { %1385 = dma.done.wait (%p45_p1), [#allocation9], 256  }
  0x4c   : > { %1387 = vsyncadd (%p45_p1), [#allocation9], 4294967040  ;;  %v1596_v0 = vld [vmem:[%s246_s7] sm:$0xff]  ;;  %v1598_v1 = vld [vmem:[%s236_s13] sm:$0xff]  ;;  %s1414_s19 = smov 112   ;;  %vm459_vm6 = vcmask 64512  }
  0x4d   : > { %291 = vadd.xlane.f32.xlu0 %v1596_v0  ;;  %357 = vadd.xlane.f32.xlu1 %v1598_v1  ;;  %v293_v2 = vmul.f32 %v1596_v0, %v1596_v0  ;;  %v359_v3 = vmul.f32 %v1598_v1, %v1598_v1  ;;  %v332_v4 = vld [vmem:[#allocation7 + $0x2e8] sm:$0xff]  ;;  %v331_v5 = vld [vmem:[#allocation7 + $0x2b8] sm:$0xff]  ;;  %v398_v22 = vld [vmem:[#allocation7 + $0x2d0] sm:$0xff]  ;;  %s1415_s11 = smov 120   ;;  %s1416_s12 = smov 104   ;;  %vm731_vm7 = vcmask 130048  }
  0x4e   : > { %335 = vmatpush.msra.mxu0 %v332_v4  ;;  %v330_v6 = vld [vmem:[#allocation7 + $0x288] sm:$0xff]  ;;  %v329_v7 = vld [vmem:[#allocation7 + $0x258] sm:$0xff]  ;;  %401 = vmatpush.msra.mxu1 %v398_v22  ;;  %v397_v41 = vld [vmem:[#allocation7 + $0x2a0] sm:$0xff]  ;;  %s1417_s9 = smov 88   ;;  %s1418_s20 = smov 80   ;;  %vm733_vm8 = vcmask 195584  }
  0x4f   : > { %v328_v8 = vld [vmem:[#allocation7 + $0x228] sm:$0xff]  ;;  %v327_v9 = vld [vmem:[#allocation7 + $0x1f8] sm:$0xff]  ;;  %v396_v42 = vld [vmem:[#allocation7 + $0x270] sm:$0xff]  ;;  %s1419_s26 = smov 72   ;;  %s1420_s14 = smov 96   ;;  %vm735_vm9 = vcmask 261120  }
  0x50   : > { %336 = vmatpush.msra.mxu0 %v331_v5  ;;  %v326_v10 = vld [vmem:[#allocation7 + $0x1c8] sm:$0xff]  ;;  %v325_v11 = vld [vmem:[#allocation7 + $0x198] sm:$0xff]  ;;  %402 = vmatpush.msra.mxu1 %v397_v41  ;;  %v395_v44 = vld [vmem:[#allocation7 + $0x240] sm:$0xff]  ;;  %s1421_s29 = smov 8   ;;  %s1422_s27 = smov 16  }
  0x51   : > { %v324_v12 = vld [vmem:[#allocation7 + $0x168] sm:$0xff]  ;;  %v323_v13 = vld [vmem:[#allocation7 + $0x138] sm:$0xff]  ;;  %v394_v47 = vld [vmem:[#allocation7 + $0x210] sm:$0xff]  ;;  %s1423_s28 = smov 24   ;;  %s1081_s30 = sshll.u32 %s1473_s22, 3 }
  0x52   : > { %337 = vmatpush.msra.mxu0 %v330_v6  ;;  %v322_v14 = vld [vmem:[#allocation7 + $0x108] sm:$0xff]  ;;  %v321_v15 = vld [vmem:[#allocation7 + $0xd8] sm:$0xff]  ;;  %403 = vmatpush.msra.mxu1 %v396_v42  ;;  %v393_v49 = vld [vmem:[#allocation7 + $0x1e0] sm:$0xff]  ;;  %s933_s6 = scalar_lea.hbm %s1690_s4, %s1081_s30  ;;  %s286_s13 = scalar_lea.vmem [#allocation10], %s1574_s5 }
  0x53   : > { %v320_v16 = vld [vmem:[#allocation7 + $0xa8] sm:$0xff]  ;;  %v319_v17 = vld [vmem:[#allocation7 + $0x78] sm:$0xff]  ;;  %v392_v52 = vld [vmem:[#allocation7 + $0x1b0] sm:$0xff]  ;;  %s935_s3 = sshll.u32 %s286_s13, 4  ;;  %s937_s23 = sshll.u32 %s933_s6, 4  ;;  %s936_s3 = int_to_ptr.vmem [resolvable:$true] %s935_s3  ;;  %s938_s23 = int_to_ptr.hbm [resolvable:$true] %s937_s23 }
  0x54   : > { %338 = vmatpush.msra.mxu0 %v329_v7  ;;  %v318_v19 = vld [vmem:[#allocation7 + $0x48] sm:$0xff]  ;;  %v317_v20 = vld [vmem:[#allocation7 + $0x18] sm:$0xff]  ;;  %404 = vmatpush.msra.mxu1 %v395_v44  ;;  %v391_v54 = vld [vmem:[#allocation7 + $0x180] sm:$0xff]  ;;  %s923_s7 = scalar_lea.sflag [#allocation4], %s1571_s25  ;;  %s1348_s5 = scalar_lea.hbm %s1690_s4, 16 }
  0x55   : > { %294 = vadd.xlane.f32.xlu0 %v293_v2  ;;  %360 = vadd.xlane.f32.xlu1 %v359_v3  ;;  %v1170_v35 = vld [vmem:[#allocation8 + $0x8] ss:$0 sm:$0xff]  ;;  %v1171_v38 = vld [vmem:[#allocation8 + $0x9] ss:$0 sm:$0xff]  ;;  %v436_v45 = vld [vmem:[#allocation7 + $0x2d8] sm:$0xff] }
  0x56   : > { %339 = vmatpush.msra.mxu0 %v328_v8  ;;  %v435_v46 = vld [vmem:[#allocation7 + $0x2a8] sm:$0xff]  ;;  %439 = vmatpush.msra.mxu2 %v436_v45  ;;  %v434_v48 = vld [vmem:[#allocation7 + $0x278] sm:$0xff]  ;;  %v390_v58 = vld [vmem:[#allocation7 + $0x150] sm:$0xff] }
  0x57   : > { %405 = vmatpush.msra.mxu1 %v394_v47  ;;  %v433_v51 = vld [vmem:[#allocation7 + $0x248] sm:$0xff]  ;;  %v432_v53 = vld [vmem:[#allocation7 + $0x218] sm:$0xff]  ;;  %v389_v61 = vld [vmem:[#allocation7 + $0x120] sm:$0xff] }
  0x58   : > { %340 = vmatpush.msra.mxu0 %v327_v9  ;;  %440 = vmatpush.msra.mxu2 %v435_v46  ;;  %v431_v56 = vld [vmem:[#allocation7 + $0x1e8] sm:$0xff]  ;;  %v430_v60 = vld [vmem:[#allocation7 + $0x1b8] sm:$0xff]  ;;  %v387_v4 = vld [vmem:[#allocation7 + $0xc0] sm:$0xff] }
  0x59   : > { %406 = vmatpush.msra.mxu1 %v393_v49  ;;  %v429_v63 = vld [vmem:[#allocation7 + $0x188] sm:$0xff]  ;;  %v428_v3 = vld [vmem:[#allocation7 + $0x158] sm:$0xff]  ;;  %v386_v6 = vld [vmem:[#allocation7 + $0x90] sm:$0xff] }
  0x5a   : > { %341 = vmatpush.msra.mxu0 %v326_v10  ;;  %441 = vmatpush.msra.mxu2 %v434_v48  ;;  %v427_v5 = vld [vmem:[#allocation7 + $0x128] sm:$0xff]  ;;  %v426_v7 = vld [vmem:[#allocation7 + $0xf8] sm:$0xff]  ;;  %v385_v8 = vld [vmem:[#allocation7 + $0x60] sm:$0xff] }
  0x5b   : > { %407 = vmatpush.msra.mxu1 %v392_v52  ;;  %v425_v9 = vld [vmem:[#allocation7 + $0xc8] sm:$0xff]  ;;  %v384_v10 = vld [vmem:[#allocation7 + $0x30] sm:$0xff] }
  0x5c   : > { %342 = vmatpush.msra.mxu0 %v325_v11  ;;  %442 = vmatpush.msra.mxu2 %v433_v51 }
  0x5d   : > { %408 = vmatpush.msra.mxu1 %v391_v54 }
  0x5e   : > { %343 = vmatpush.msra.mxu0 %v324_v12  ;;  %443 = vmatpush.msra.mxu2 %v432_v53  ;;  %v424_v12 = vld [vmem:[#allocation7 + $0x98] sm:$0xff] }
  0x5f   : > { %409 = vmatpush.msra.mxu1 %v390_v58 }
  0x60   : > { %344 = vmatpush.msra.mxu0 %v323_v13  ;;  %444 = vmatpush.msra.mxu2 %v431_v56 }
  0x61   : > { %410 = vmatpush.msra.mxu1 %v389_v61 }
  0x62   : > { %345 = vmatpush.msra.mxu0 %v322_v14  ;;  %445 = vmatpush.msra.mxu2 %v430_v60  ;;  %v383_v14 = vld [vmem:[#allocation7] sm:$0xff] }
  0x64   : > { %346 = vmatpush.msra.mxu0 %v321_v15  ;;  %446 = vmatpush.msra.mxu2 %v429_v63  ;;  %v423_v15 = vld [vmem:[#allocation7 + $0x68] sm:$0xff] }
  0x66   : > { %347 = vmatpush.msra.mxu0 %v320_v16  ;;  %447 = vmatpush.msra.mxu2 %v428_v3 }
  0x68   : > { %348 = vmatpush.msra.mxu0 %v319_v17  ;;  %448 = vmatpush.msra.mxu2 %v427_v5 }
  0x6a   : > { %349 = vmatpush.msra.mxu0 %v318_v19  ;;  %449 = vmatpush.msra.mxu2 %v426_v7 }
  0x6c   : > { %350 = vmatpush.msra.mxu0 %v317_v20  ;;  %450 = vmatpush.msra.mxu2 %v425_v9 }
  0x6e   : > { %451 = vmatpush.msra.mxu2 %v424_v12 }
  0x70   : > { %452 = vmatpush.msra.mxu2 %v423_v15 }
  0xc0   : > { %v292_v18 = vpop.xlane.xlu0 %291  ;;  %v358_v43 = vpop.xlane.xlu1 %357 }
  0xc1   : > { %v296_v21 = vmul.f32 0.03125, %v292_v18  ;;  %v1607_v50 = vmul.f32 0.03125, %v358_v43 }
  0xc3   : > { %v298_v24 = vmul.f32 %v296_v21, %v296_v21  ;;  %v300_v34 = vsub.f32 %v1596_v0, %v296_v21  ;;  %v364_v55 = vmul.f32 %v1607_v50, %v1607_v50  ;;  %v388_v0 = vld [vmem:[#allocation7 + $0xf0] sm:$0xff]  ;;  %v366_v19 = vsub.f32 %v1598_v1, %v1607_v50  ;;  %v1172_v21 = vld [vmem:[#allocation8] ss:$0 sm:$0xff] }
  0xc4   : > { %411 = vmatpush.msra.mxu1 %v388_v0 }
  0xc6   : > { %412 = vmatpush.msra.mxu1 %v387_v4 }
  0xc8   : > { %v295_v23 = vpop.xlane.xlu0 %294  ;;  %v361_v57 = vpop.xlane.xlu1 %360  ;;  %413 = vmatpush.msra.mxu1 %v386_v6 }
  0xc9   : > { %v297_v25 = vmul.f32 0.03125, %v295_v23  ;;  %v363_v59 = vmul.f32 0.03125, %v361_v57 }
  0xca   : > { %414 = vmatpush.msra.mxu1 %v385_v8 }
  0xcb   : > { %v299_v26 = vsub.f32 %v297_v25, %v298_v24  ;;  %v365_v62 = vsub.f32 %v363_v59, %v364_v55  ;;  %v1173_v24 = vld [vmem:[#allocation8 + $0x1] ss:$0 sm:$0xff] }
  0xcc   : > { %415 = vmatpush.msra.mxu1 %v384_v10 }
  0xcd   : > { %v301_v27 = vadd.f32 1e-05, %v299_v26  ;;  %v367_v2 = vadd.f32 1e-05, %v365_v62 }
  0xce   : > { %416 = vmatpush.msra.mxu1 %v383_v14 }
  0xcf   : > { %1182 = vrsqrt.f32 %v301_v27  ;;  %vm308_vm1 = vweird.f32 %v301_v27  ;;  %vm374_vm3 = vweird.f32 %v367_v2 }
  0xd0   : > { %1184 = vrsqrt.f32 %v367_v2 }
  0xd5   : > { %v1183_v28 = vpop.eup %1182 }
  0xd6   : > { %v303_v29 = vmul.f32 %v1183_v28, %v301_v27  ;;  %vm309_vm0 = vweird.f32 %v1183_v28  ;;  %v1185_v11 = vpop.eup %1184  ;;  %v422_v27 = vld [vmem:[#allocation7 + $0x38] sm:$0xff] }
  0xd7   : > { %vm310_vm2 = vmor %vm308_vm1, %vm309_vm0  ;;  %v369_v13 = vmul.f32 %v1185_v11, %v367_v2  ;;  %vm375_vm4 = vweird.f32 %v1185_v11  ;;  %453 = vmatpush.msra.mxu2 %v422_v27 }
  0xd8   : > { %v304_v30 = vmul.f32 %v1183_v28, %v303_v29  ;;  %vm376_vm5 = vmor %vm374_vm3, %vm375_vm4  ;;  %v1174_v29 = vld [vmem:[#allocation8 + $0xa] ss:$0 sm:$0xff] }
  0xd9   : > { %v370_v16 = vmul.f32 %v1185_v11, %v369_v13 }
  0xda   : > { %v305_v31 = vmul.f32 0.5, %v304_v30 }
  0xdb   : > { %v371_v17 = vmul.f32 0.5, %v370_v16 }
  0xdc   : > { %v306_v32 = vsub.f32 1.5, %v305_v31 }
  0xdd   : > { %v372_v18 = vsub.f32 1.5, %v371_v17 }
  0xde   : > { %v307_v33 = vmul.f32 %v1183_v28, %v306_v32  ;;  %v1175_v32 = vld [vmem:[#allocation8 + $0x2] ss:$0 sm:$0xff] }
  0xdf   : > { %v373_v20 = vmul.f32 %v1185_v11, %v372_v18 }
  0xe0   : > { %v311_v36 = vsel %vm310_vm2, %v1183_v28, %v307_v33  ;;  %v421_v28 = vld [vmem:[#allocation7 + $0x8] sm:$0xff] }
  0xe1   : > { %v312_v37 = vmul.f32 %v311_v36, %v300_v34  ;;  %v377_v22 = vsel %vm376_vm5, %v1185_v11, %v373_v20  ;;  %454 = vmatpush.msra.mxu2 %v421_v28  ;;  %v752_v28 = vld [vmem:[#allocation7 + $0x2e0] sm:$0xff] }
  0xe2   : > { %v378_v23 = vmul.f32 %v377_v22, %v366_v19 }
  0xe3   : > { %v314_v39 = vmul.f32 %v1170_v35, %v312_v37  ;;  %v1176_v35 = vld [vmem:[#allocation8 + $0x3] ss:$0 sm:$0xff] }
  0xe4   : > { %v380_v25 = vmul.f32 %v1172_v21, %v378_v23 }
  0xe5   : > { %v316_v40 = vadd.f32 %v1171_v38, %v314_v39 }
  0xe6   : > { %v382_v26 = vadd.f32 %v1173_v24, %v380_v25 }
  0xe7   : > { %351 = vmatmul.f32.vlgmr.msra.gmra.mxu0 %v316_v40 }
  0xe8   : > { %417 = vmatmul.f32.vlgmr.msra.gmra.mxu1 %v382_v26 }
 0x164   : > { %v352_v30 = vpop.f32.mrf.mxu0 }
 0x165   : > { %v353_v31 = vadd.f32 %v1174_v29, %v352_v30  ;;  %v418_v33 = vpop.f32.mrf.mxu1  ;;  %v751_v29 = vld [vmem:[#allocation7 + $0x2b0] sm:$0xff]  ;;  %v750_v30 = vld [vmem:[#allocation7 + $0x280] sm:$0xff] }
 0x166   : > { %v419_v34 = vadd.f32 %v1175_v32, %v418_v33  ;;  %v748_v32 = vld [vmem:[#allocation7 + $0x220] sm:$0xff]  ;;  %v747_v33 = vld [vmem:[#allocation7 + $0x1f0] sm:$0xff] }
 0x167   : > { %455 = vmatmul.f32.vlgmr.msra.gmra.mxu2 %v353_v31  ;;  %v749_v31 = vld [vmem:[#allocation7 + $0x250] sm:$0xff] }
 0x168   : > { %514 = vrot.lane.b32.xlu1 %v419_v34, %s1414_s19 }
 0x1da   : > { %v515_v42 = vpop.permute.xlu1 %514 }
 0x1ea   : > { %v456_v36 = vpop.f32.mrf.mxu2 }
 0x1eb   : > { %v1613_v37 = vadd.f32 %v1176_v35, %v456_v36  ;;  %v745_v35 = vld [vmem:[#allocation7 + $0x190] sm:$0xff]  ;;  %v744_v36 = vld [vmem:[#allocation7 + $0x160] sm:$0xff] }
 0x1ed   : > { %516 = vrot.lane.b32.xlu0 %v1613_v37, %s1414_s19  ;;  %488 = vrot.lane.b32.xlu2 %v1613_v37, %s1415_s11  ;;  %s1342_s19 = sshra.s32 %s938_s23, 4  ;;  %s1343_s19 = int_to_ptr.hbm [resolvable:$true] %s1342_s19 }
 0x1ee   : > { %1065 = vmatpush.xpose.msk.msrb.mxu2 %vm459_vm6, %v1613_v37  ;;  %s1344_s22 = scalar_lea.hbm %s1343_s19, 8  ;;  %p1349_p7 = scmp.lt.s32.totalorder %s1343_s19, %s1690_s4 }
 0x1ef   : > { %p1345_p1 = scmp.ne.s32.totalorder %s1343_s19, %s1344_s22  ;;  %p1350_p9 = scmp.lt.s32.totalorder %s1348_s5, %s1344_s22 }
 0x1f1   : > { %1066 = vmatmul.msk.f32.vlgmr.msrb.gmra.mxu2 %vm459_vm6, %v419_v34  ;;  %p1346_p3 = pnand %p1345_p1, %p1518_p4  ;;  %p1351_p8 = por %p1350_p9, %p1349_p7 }
 0x1f3   : > { %p1347_p12 = pneg %p1346_p3 }
 0x1f5   : > { %486 = vrot.lane.b32.xlu2 %v419_v34, %s1415_s11  ;;  %p1352_p10 = pnand %p1351_p8, %p1347_p12 }
 0x1fd   : > { %544 = vrot.lane.b32.xlu2 %v1613_v37, %s1416_s12 }
 0x205   : > { %542 = vrot.lane.b32.xlu2 %v419_v34, %s1416_s12  ;;  %v746_v34 = vld [vmem:[#allocation7 + $0x1c0] sm:$0xff] }
 0x247   : > { %v489_v38 = vpop.permute.xlu2 %488 }
 0x248   : > { %1067 = vmatpush.xpose.msk.msra.mxu3 %vm459_vm6, %v489_v38  ;;  %v742_v38 = vld [vmem:[#allocation7 + $0x100] sm:$0xff] }
 0x24f   : > { %v487_v39 = vpop.permute.xlu2 %486 }
 0x250   : > { %1068 = vmatmul.msk.f32.vlgmr.msra.gmra.mxu3 %vm459_vm6, %v487_v39  ;;  %v741_v39 = vld [vmem:[#allocation7 + $0xd0] sm:$0xff] }
 0x257   : > { %v545_v41 = vpop.permute.xlu2 %544 }
 0x25f   : > { %v517_v40 = vpop.permute.xlu0 %516  ;;  %v543_v43 = vpop.permute.xlu2 %542 }
 0x260   : > { %1069 = vmatpush.xpose.msk.msrb.mxu3 %vm459_vm6, %v517_v40  ;;  %v740_v40 = vld [vmem:[#allocation7 + $0xa0] sm:$0xff] }
 0x263   : > { %1070 = vmatmul.msk.f32.vlgmr.msrb.gmra.mxu3 %vm459_vm6, %v515_v42  ;;  %v738_v42 = vld [vmem:[#allocation7 + $0x40] sm:$0xff] }
 0x264   : > { %1071 = vmatpush.xpose.msk.msra.mxu3 %vm459_vm6, %v545_v41  ;;  %v739_v41 = vld [vmem:[#allocation7 + $0x70] sm:$0xff] }
 0x26b   : > { %1072 = vmatmul.msk.f32.vlgmr.msra.gmra.mxu3 %vm459_vm6, %v543_v43  ;;  %v737_v43 = vld [vmem:[#allocation7 + $0x10] sm:$0xff] }
 0x274   : > { %v483_v48 = vpop.f32.mrf.mxu2 }
 0x275   : > { %v570_v51 = vsel %vm459_vm6, %v483_v48, -inf }
 0x2d3   : > { %v511_v44 = vpop.f32.mrf.mxu3 }
 0x2d4   : > { %v573_v45 = vsel %vm459_vm6, %v511_v44, -inf }
 0x2d5   : > { %574 = vmax.xlane.f32.xlu2 %v573_v45 }
 0x2e6   : > { %v539_v46 = vpop.f32.mrf.mxu3 }
 0x2e7   : > { %v576_v47 = vsel %vm459_vm6, %v539_v46, -inf }
 0x2e8   : > { %577 = vmax.xlane.f32.xlu0 %v576_v47 }
 0x2ee   : > { %v567_v49 = vpop.f32.mrf.mxu3 }
 0x2ef   : > { %v579_v50 = vsel %vm459_vm6, %v567_v49, -inf }
 0x2f0   : > { %580 = vmax.xlane.f32.xlu1 %v579_v50  ;;  %571 = vmax.xlane.f32.xlu0 %v570_v51  ;;  %v1177_v51 = vld [vmem:[#allocation8 + $0x4] ss:$0 sm:$0xff] }
 0x309   : > { %640 = vrot.lane.b32.xlu1 %v1613_v37, %s1417_s9 }
 0x348   : > { %v575_v52 = vpop.xlane.xlu2 %574 }
 0x349   : > { %v583_v53 = vsub.f32 %v511_v44, %v575_v52 }
 0x34b   : > { %v588_v54 = vmul.f32 1.442695, %v583_v53 }
 0x34d   : > { %1186 = vpow2.f32 %v588_v54 }
 0x353   : > { %v1187_v55 = vpop.eup %1186 }
 0x354   : > { %v597_v56 = vsel %vm459_vm6, %v1187_v55, 0.0 }
 0x355   : > { %598 = vadd.xlane.f32.xlu2 %v597_v56  ;;  %v819_v56 = vld [vmem:[#allocation7 + $0x2f0] sm:$0xff] }
 0x356   : > { %822 = vmatpush.msrb.mxu0 %v819_v56 }
 0x35b   : > { %v578_v57 = vpop.xlane.xlu0 %577 }
 0x35c   : > { %v584_v58 = vsub.f32 %v539_v46, %v578_v57  ;;  %v818_v57 = vld [vmem:[#allocation7 + $0x2c0] sm:$0xff] }
 0x35d   : > { %823 = vmatpush.msrb.mxu0 %v818_v57 }
 0x35e   : > { %v590_v59 = vmul.f32 1.442695, %v584_v58  ;;  %v817_v58 = vld [vmem:[#allocation7 + $0x290] sm:$0xff] }
 0x35f   : > { %824 = vmatpush.msrb.mxu0 %v817_v58 }
 0x360   : > { %1188 = vpow2.f32 %v590_v59  ;;  %v816_v59 = vld [vmem:[#allocation7 + $0x260] sm:$0xff] }
 0x361   : > { %825 = vmatpush.msrb.mxu0 %v816_v59 }
 0x363   : > { %v581_v60 = vpop.xlane.xlu1 %580  ;;  %v572_v61 = vpop.xlane.xlu0 %571 }
 0x364   : > { %v585_v62 = vsub.f32 %v567_v49, %v581_v60  ;;  %v582_v63 = vsub.f32 %v483_v48, %v572_v61  ;;  %v815_v60 = vld [vmem:[#allocation7 + $0x230] sm:$0xff]  ;;  %v814_v61 = vld [vmem:[#allocation7 + $0x200] sm:$0xff] }
 0x365   : > { %826 = vmatpush.msrb.mxu0 %v815_v60 }
 0x366   : > { %v1189_v0 = vpop.eup %1188  ;;  %v592_v2 = vmul.f32 1.442695, %v585_v62  ;;  %v586_v3 = vmul.f32 1.442695, %v582_v63  ;;  %v812_v62 = vld [vmem:[#allocation7 + $0x1a0] sm:$0xff]  ;;  %v811_v63 = vld [vmem:[#allocation7 + $0x170] sm:$0xff] }
 0x367   : > { %v600_v4 = vsel %vm459_vm6, %v1189_v0, 0.0  ;;  %827 = vmatpush.msrb.mxu0 %v814_v61 }
 0x368   : > { %1190 = vpow2.f32 %v592_v2  ;;  %601 = vadd.xlane.f32.xlu2 %v600_v4  ;;  %v809_v2 = vld [vmem:[#allocation7 + $0x110] sm:$0xff] }
 0x369   : > { %1192 = vpow2.f32 %v586_v3  ;;  %v808_v3 = vld [vmem:[#allocation7 + $0xe0] sm:$0xff]  ;;  %v807_v4 = vld [vmem:[#allocation7 + $0xb0] sm:$0xff] }
 0x36e   : > { %v1191_v5 = vpop.eup %1190 }
 0x36f   : > { %v1193_v6 = vpop.eup %1192  ;;  %v603_v7 = vsel %vm459_vm6, %v1191_v5, 0.0 }
 0x370   : > { %604 = vadd.xlane.f32.xlu0 %v603_v7  ;;  %v594_v8 = vsel %vm459_vm6, %v1193_v6, 0.0  ;;  %v804_v7 = vld [vmem:[#allocation7 + $0x20] sm:$0xff] }
 0x371   : > { %595 = vadd.xlane.f32.xlu1 %v594_v8 }
 0x37b   : > { %v641_v9 = vpop.permute.xlu1 %640 }
 0x37c   : > { %661 = vmatpush.msra.mxu2 %v641_v9 }
 0x380   : > { %666 = vrot.lane.b32.xlu2 %v1613_v37, %s1418_s20 }
 0x384   : > { %692 = vrot.lane.b32.xlu0 %v1613_v37, %s1419_s26 }
 0x388   : > { %614 = vrot.lane.b32.xlu2 %v1613_v37, %s1420_s14  ;;  %v743_v37 = vld [vmem:[#allocation7 + $0x130] sm:$0xff] }
 0x3c8   : > { %v599_v10 = vpop.xlane.xlu2 %598 }
 0x3c9   : > { %1194 = vrcp.f32 %v599_v10 }
 0x3cf   : > { %v1195_v11 = vpop.eup %1194 }
 0x3d0   : > { %v611_v12 = vmul.f32 %v1195_v11, %v1187_v55 }
 0x3d2   : > { %1074 = vmatmul.msk.f32.vlgmr.msra.gmra.mxu2 %vm459_vm6, %v611_v12 }
 0x3db   : > { %v602_v13 = vpop.xlane.xlu2 %601 }
 0x3dc   : > { %1196 = vrcp.f32 %v602_v13 }
 0x3e2   : > { %v1197_v14 = vpop.eup %1196 }
 0x3e3   : > { %v612_v15 = vmul.f32 %v1197_v14, %v1189_v0  ;;  %v667_v16 = vpop.permute.xlu2 %666  ;;  %v605_v18 = vpop.xlane.xlu0 %604  ;;  %v810_v0 = vld [vmem:[#allocation7 + $0x140] sm:$0xff] }
 0x3e4   : > { %v596_v17 = vpop.xlane.xlu1 %595  ;;  %687 = vmatpush.msrb.mxu2 %v667_v16 }
 0x3e5   : > { %1198 = vrcp.f32 %v596_v17  ;;  %1075 = vmatmul.msk.f32.vlgmr.msrb.gmra.mxu2 %vm459_vm6, %v612_v15 }
 0x3e6   : > { %1200 = vrcp.f32 %v605_v18 }
 0x3eb   : > { %v1199_v19 = vpop.eup %1198  ;;  %v615_v20 = vpop.permute.xlu2 %614 }
 0x3ec   : > { %v610_v21 = vmul.f32 %v1199_v19, %v1193_v6  ;;  %635 = vmatpush.msrb.mxu3 %v615_v20  ;;  %v1201_v22 = vpop.eup %1200  ;;  %v805_v6 = vld [vmem:[#allocation7 + $0x50] sm:$0xff] }
 0x3ed   : > { %v613_v23 = vmul.f32 %v1201_v22, %v1191_v5  ;;  %v806_v5 = vld [vmem:[#allocation7 + $0x80] sm:$0xff] }
 0x3ee   : > { %1073 = vmatmul.msk.f32.vlgmr.msrb.gmra.mxu3 %vm459_vm6, %v610_v21  ;;  %v1178_v22 = vld [vmem:[#allocation8 + $0x5] ss:$0 sm:$0xff] }
 0x3ef   : > { %755 = vmatpush.msra.mxu3 %v752_v28  ;;  %v897_v28 = vld [vmem:[#allocation7 + $0x2f8] sm:$0xff] }
 0x3f0   : > { %900 = vmatpush.msrb.mxu1 %v897_v28 }
 0x3f1   : > { %756 = vmatpush.msra.mxu3 %v751_v29  ;;  %v896_v29 = vld [vmem:[#allocation7 + $0x2c8] sm:$0xff] }
 0x3f2   : > { %901 = vmatpush.msrb.mxu1 %v896_v29 }
 0x3f3   : > { %757 = vmatpush.msra.mxu3 %v750_v30  ;;  %v895_v30 = vld [vmem:[#allocation7 + $0x298] sm:$0xff] }
 0x3f4   : > { %902 = vmatpush.msrb.mxu1 %v895_v30 }
 0x3f5   : > { %758 = vmatpush.msra.mxu3 %v749_v31  ;;  %v894_v31 = vld [vmem:[#allocation7 + $0x268] sm:$0xff] }
 0x3f6   : > { %v693_v24 = vpop.permute.xlu0 %692  ;;  %903 = vmatpush.msrb.mxu1 %v894_v31 }
 0x3f7   : > { %713 = vmatpush.msra.mxu2 %v693_v24  ;;  %759 = vmatpush.msra.mxu3 %v748_v32  ;;  %v893_v32 = vld [vmem:[#allocation7 + $0x238] sm:$0xff] }
 0x3f8   : > { %1076 = vmatmul.msk.f32.vlgmr.msra.gmra.mxu2 %vm459_vm6, %v613_v23  ;;  %904 = vmatpush.msrb.mxu1 %v893_v32 }
 0x3f9   : > { %760 = vmatpush.msra.mxu3 %v747_v33  ;;  %v1180_v33 = vld [vmem:[#allocation8 + $0xb] ss:$0 sm:$0xff] }
 0x3fb   : > { %761 = vmatpush.msra.mxu3 %v746_v34  ;;  %v892_v34 = vld [vmem:[#allocation7 + $0x208] sm:$0xff] }
 0x3fc   : > { %905 = vmatpush.msrb.mxu1 %v892_v34 }
 0x3fd   : > { %762 = vmatpush.msra.mxu3 %v745_v35 }
 0x3ff   : > { %763 = vmatpush.msra.mxu3 %v744_v36  ;;  %v891_v36 = vld [vmem:[#allocation7 + $0x1d8] sm:$0xff] }
 0x400   : > { %906 = vmatpush.msrb.mxu1 %v891_v36 }
 0x401   : > { %764 = vmatpush.msra.mxu3 %v743_v37 }
 0x403   : > { %765 = vmatpush.msra.mxu3 %v742_v38  ;;  %v890_v38 = vld [vmem:[#allocation7 + $0x1a8] sm:$0xff] }
 0x404   : > { %907 = vmatpush.msrb.mxu1 %v890_v38 }
 0x405   : > { %766 = vmatpush.msra.mxu3 %v741_v39 }
 0x407   : > { %767 = vmatpush.msra.mxu3 %v740_v40  ;;  %v889_v40 = vld [vmem:[#allocation7 + $0x178] sm:$0xff] }
 0x408   : > { %908 = vmatpush.msrb.mxu1 %v889_v40 }
 0x409   : > { %768 = vmatpush.msra.mxu3 %v739_v41 }
 0x40b   : > { %769 = vmatpush.msra.mxu3 %v738_v42  ;;  %v888_v42 = vld [vmem:[#allocation7 + $0x148] sm:$0xff] }
 0x40c   : > { %909 = vmatpush.msrb.mxu1 %v888_v42 }
 0x40d   : > { %770 = vmatpush.msra.mxu3 %v737_v43 }
 0x455   : > { %v663_v25 = vpop.f32.mrf.mxu2 }
 0x456   : > { %719 = vrot.lane.b32.xlu0 %v663_v25, %s1421_s29  ;;  %v1179_v25 = vld [vmem:[#allocation8 + $0x6] ss:$0 sm:$0xff] }
 0x468   : > { %v689_v26 = vpop.f32.mrf.mxu2 }
 0x469   : > { %723 = vrot.lane.b32.xlu2 %v689_v26, %s1422_s27 }
 0x471   : > { %v637_v45 = vpop.f32.mrf.mxu3 }
 0x47b   : > { %v715_v27 = vpop.f32.mrf.mxu2 }
 0x47c   : > { %727 = vrot.lane.b32.xlu0 %v715_v27, %s1423_s28 }
 0x4c3   : > { %v724_v47 = vpop.permute.xlu2 %723 }
 0x4c8   : > { %v720_v44 = vpop.permute.xlu0 %719 }
 0x4c9   : > { %v730_v46 = vsel %vm459_vm6, %v637_v45, %v720_v44  ;;  %v887_v44 = vld [vmem:[#allocation7 + $0x118] sm:$0xff] }
 0x4ca   : > { %v732_v48 = vsel %vm731_vm7, %v730_v46, %v724_v47  ;;  %v886_v46 = vld [vmem:[#allocation7 + $0xe8] sm:$0xff]  ;;  %910 = vmatpush.msrb.mxu1 %v887_v44  ;;  %v885_v47 = vld [vmem:[#allocation7 + $0xb8] sm:$0xff] }
 0x4cc   : > { %911 = vmatpush.msrb.mxu1 %v886_v46 }
 0x4ce   : > { %912 = vmatpush.msrb.mxu1 %v885_v47 }
 0x4ee   : > { %v728_v49 = vpop.permute.xlu0 %727 }
 0x4ef   : > { %v734_v50 = vsel %vm733_vm8, %v732_v48, %v728_v49  ;;  %v884_v48 = vld [vmem:[#allocation7 + $0x88] sm:$0xff]  ;;  %v883_v49 = vld [vmem:[#allocation7 + $0x58] sm:$0xff] }
 0x4f0   : > { %1077 = vmatmul.msk.f32.vlgmr.msra.gmra.mxu3 %vm735_vm9, %v734_v50  ;;  %913 = vmatpush.msrb.mxu1 %v884_v48 }
 0x4f2   : > { %914 = vmatpush.msrb.mxu1 %v883_v49 }
 0x573   : > { %v772_v52 = vpop.f32.mrf.mxu3 }
 0x574   : > { %v773_v53 = vadd.f32 %v1177_v51, %v772_v52  ;;  %v882_v52 = vld [vmem:[#allocation7 + $0x28] sm:$0xff] }
 0x575   : > { %915 = vmatpush.msrb.mxu1 %v882_v52 }
 0x576   : > { %v1645_v54 = vadd.f32 %v773_v53, %v1598_v1  ;;  %v813_v1 = vld [vmem:[#allocation7 + $0x1d0] sm:$0xff] }
 0x577   : > { %828 = vmatpush.msrb.mxu0 %v813_v1 }
 0x578   : > { %778 = vadd.xlane.f32.xlu2 %v1645_v54  ;;  %v780_v55 = vmul.f32 %v1645_v54, %v1645_v54 }
 0x579   : > { %829 = vmatpush.msrb.mxu0 %v812_v62 }
 0x57a   : > { %781 = vadd.xlane.f32.xlu0 %v780_v55 }
 0x57b   : > { %830 = vmatpush.msrb.mxu0 %v811_v63 }
 0x57d   : > { %831 = vmatpush.msrb.mxu0 %v810_v0 }
 0x57f   : > { %832 = vmatpush.msrb.mxu0 %v809_v2 }
 0x581   : > { %833 = vmatpush.msrb.mxu0 %v808_v3 }
 0x583   : > { %834 = vmatpush.msrb.mxu0 %v807_v4 }
 0x585   : > { %835 = vmatpush.msrb.mxu0 %v806_v5 }
 0x587   : > { %836 = vmatpush.msrb.mxu0 %v805_v6 }
 0x589   : > { %837 = vmatpush.msrb.mxu0 %v804_v7 }
 0x5eb   : > { %v779_v8 = vpop.xlane.xlu2 %778 }
 0x5ec   : > { %v783_v9 = vmul.f32 0.03125, %v779_v8 }
 0x5ed   : > { %v782_v10 = vpop.xlane.xlu0 %781 }
 0x5ee   : > { %v785_v11 = vmul.f32 %v783_v9, %v783_v9  ;;  %v784_v12 = vmul.f32 0.03125, %v782_v10  ;;  %v787_v21 = vsub.f32 %v1645_v54, %v783_v9 }
 0x5f0   : > { %v786_v13 = vsub.f32 %v784_v12, %v785_v11 }
 0x5f2   : > { %v788_v14 = vadd.f32 1e-05, %v786_v13 }
 0x5f4   : > { %1202 = vrsqrt.f32 %v788_v14  ;;  %vm795_vm11 = vweird.f32 %v788_v14 }
 0x5fa   : > { %v1203_v15 = vpop.eup %1202 }
 0x5fb   : > { %v790_v16 = vmul.f32 %v1203_v15, %v788_v14  ;;  %vm796_vm10 = vweird.f32 %v1203_v15 }
 0x5fc   : > { %vm797_vm12 = vmor %vm795_vm11, %vm796_vm10 }
 0x5fd   : > { %v791_v17 = vmul.f32 %v1203_v15, %v790_v16 }
 0x5ff   : > { %v792_v18 = vmul.f32 0.5, %v791_v17 }
 0x601   : > { %v793_v19 = vsub.f32 1.5, %v792_v18  ;;  %v1181_v18 = vld [vmem:[#allocation8 + $0x7] ss:$0 sm:$0xff] }
 0x603   : > { %v794_v20 = vmul.f32 %v1203_v15, %v793_v19 }
 0x605   : > { %v798_v23 = vsel %vm797_vm12, %v1203_v15, %v794_v20 }
 0x606   : > { %v799_v24 = vmul.f32 %v798_v23, %v787_v21 }
 0x608   : > { %v801_v26 = vmul.f32 %v1178_v22, %v799_v24 }
 0x60a   : > { %v803_v27 = vadd.f32 %v1179_v25, %v801_v26 }
 0x60c   : > { %838 = vmatmul.f32.vlgmr.msrb.gmra.mxu0 %v803_v27 }
 0x689   : > { %v839_v35 = vpop.f32.mrf.mxu0 }
 0x68a   : > { %v840_v37 = vadd.f32 %v1180_v33, %v839_v35 }
 0x68c   : > { %v843_v39 = vmul.f32 0.70710677, %v840_v37  ;;  %v842_v15 = vmul.f32 0.5, %v840_v37 }
 0x68e   : > { %v844_v41 = vand.u32 2147483647, %v843_v39  ;;  %vm877_vm1 = vcmp.lt.f32.partialorder %v843_v39, 0.0 }
 0x690   : > { %v845_v43 = vmul.f32 0.3275911, %v844_v41  ;;  %v871_v61 = vsub.f32 0.0, %v844_v41 }
 0x692   : > { %v846_v45 = vadd.f32 1.0, %v845_v43  ;;  %v872_v0 = vmul.f32 %v871_v61, %v844_v41 }
 0x694   : > { %1204 = vrcp.f32 %v846_v45  ;;  %v858_v55 = vand.u32 2147483648, %v846_v45  ;;  %v856_v57 = vand.u32 2147483647, %v846_v45  ;;  %vm852_vm14 = vweird.f32 %v846_v45 }
 0x695   : > { %v873_v4 = vmul.f32 1.442695, %v872_v0 }
 0x696   : > { %v859_v59 = vor.u32 1.1754944e-38, %v858_v55  ;;  %vm857_vm0 = vcmp.eq.f32.partialorder %v856_v57, 8.507059e+37 }
 0x697   : > { %1206 = vpow2.f32 %v873_v4 }
 0x69a   : > { %v1205_v50 = vpop.eup %1204 }
 0x69b   : > { %v848_v51 = vmul.f32 %v1205_v50, %v846_v45  ;;  %vm853_vm13 = vweird.f32 %v1205_v50 }
 0x69c   : > { %vm854_vm15 = vmor %vm852_vm14, %vm853_vm13 }
 0x69d   : > { %v849_v53 = vsub.f32 1.0, %v848_v51  ;;  %v1207_v10 = vpop.eup %1206 }
 0x69f   : > { %v850_v56 = vmul.f32 %v1205_v50, %v849_v53 }
 0x6a1   : > { %v851_v58 = vadd.f32 %v1205_v50, %v850_v56 }
 0x6a3   : > { %v855_v60 = vsel %vm854_vm15, %v1205_v50, %v851_v58 }
 0x6a4   : > { %v860_v1 = vsel %vm857_vm0, %v859_v59, %v855_v60 }
 0x6a5   : > { %v862_v62 = vmul.f32 1.0614054, %v860_v1 }
 0x6a7   : > { %v1078_v63 = vadd.f32 -1.4531521, %v862_v62 }
 0x6a9   : > { %v864_v2 = vmul.f32 %v1078_v63, %v860_v1 }
 0x6ab   : > { %v865_v3 = vadd.f32 1.4214138, %v864_v2 }
 0x6ad   : > { %v866_v5 = vmul.f32 %v865_v3, %v860_v1 }
 0x6af   : > { %v1079_v6 = vadd.f32 -0.28449672, %v866_v5 }
 0x6b1   : > { %v868_v7 = vmul.f32 %v1079_v6, %v860_v1 }
 0x6b3   : > { %v869_v8 = vadd.f32 0.2548296, %v868_v7 }
 0x6b5   : > { %v870_v9 = vmul.f32 %v869_v8, %v860_v1 }
 0x6b7   : > { %v875_v11 = vmul.f32 %v1207_v10, %v870_v9 }
 0x6b9   : > { %v876_v12 = vsub.f32 1.0, %v875_v11 }
 0x6bb   : > { %v878_v13 = vsub.f32 0.0, %v876_v12 }
 0x6bd   : > { %v879_v14 = vsel %vm877_vm1, %v878_v13, %v876_v12 }
 0x6be   : > { %v880_v16 = vadd.f32 1.0, %v879_v14 }
 0x6c0   : > { %v881_v17 = vmul.f32 %v880_v16, %v842_v15 }
 0x6c2   : > { %916 = vmatmul.f32.vlgmr.msrb.gmra.mxu1 %v881_v17 }
 0x73f   : > { %v917_v19 = vpop.f32.mrf.mxu1 }
 0x740   : > { %v918_v20 = vadd.f32 %v1181_v18, %v917_v19 }
 0x742   : > { %v920_v21 = vadd.f32 %v918_v20, %v1645_v54 }
 0x744   : > { %921 = vst [vmem:[%s286_s13] sm:$0xff] %v920_v21 }
 0x745   : > { %1355 = shalt.err (!%p1352_p10)
}
 0x746   : > { %1096 = dma.vmem_to_hbm [thread:$0]  (%p1518_p4), %s936_s3, 128, %s938_s23, %s923_s7  }
 0x747 PF: > { %s949_s25 = sand.u32 1, %s1394_s15   ;;  %p1702_p11 = scmp.ge.s32.totalorder %s1406_s18, 2 }
 0x748   : > { %s950_s26 = scalar_lea.sflag [#allocation4], %s949_s25 }
 0x749   : > { %p1113_p5 = pnand %p1702_p11, %p1522_p6 }
 0x74b   : > { %p1114_p13 = pneg %p1113_p5 }
 0x74d   : > { %1389 = dma.done.wait (%p1114_p13), %s950_s26, 128  }
 0x74e   : > { %1391 = vsyncadd (%p1114_p13), %s950_s26, 4294967168  ;;  %s1703_s14 = sld [smem:[#allocation16_spill]]  ;;  %p21_p0 = scmp.ge.s32.totalorder %s1492_s10, 4  }
 0x74f   : > { %s1704_s15 = smov %s1398_s16  ;;  %s1705_s16 = smov %s1402_s17 }
 0x750   : > { %s1707_s18 = smov %s1492_s10  ;;  %23 = sbr.rel (!%p21_p0) target bundleno = 11 (0xb), region = 102 }
 0x754   : > { %s1706_s17 = smov %s1703_s14 }
 0x755   :  { %956 = vsyncpa [#allocation3], 1 }
 0x756   :  { %958 = vsyncpa [#allocation3 + $0x1], 1 }
 0x757   :  { %959 = vsyncpa [#allocation6], 1 }
 0x758   :  { %961 = vsyncpa [#allocation6 + $0x1], 1 }
 0x759   :  { %962 = vsyncpa [#allocation9], 1 }
 0x75a   :  { %963 = vsyncpa [#allocation4], 1 }
 0x75b   :  { %965 = vsyncpa [#allocation4 + $0x1], 1 }

</bundles_post_ra>
